<compile_context>
chip_gen: v7x
topology: tpu7x:2x2x1
jax: 0.10.0
libtpu: 0.0.40
codegen_flags: <defaults>
</compile_context>

<pallas_src>
import jax
import jax.numpy as jnp
from jax.experimental import pallas as pl
from jax.experimental.pallas import tpu as pltpu

_LANE = 128          # TPU lane width
_BATCH_ALIGN = 16    # bf16 sublane packing (16, 128)


def _round_up(n, m):
    return (n + m - 1) // m * m


def _mlp_kernel(x_ref,
                w0_ref, b0_ref,
                w1_ref, b1_ref,
                w2_ref, b2_ref,
                w3_ref, b3_ref,
                wo_ref, bo_ref,
                out_ref):
    """Whole MLP forward for one batch tile, entirely in VMEM.

    All matmuls run with bf16 operands on the MXU and accumulate in f32.
    """
    bf16 = jnp.bfloat16
    f32 = jnp.float32

    def dense(h, w_ref, b_ref, relu=True):
        y = jnp.dot(h.astype(bf16), w_ref[...], preferred_element_type=f32) + b_ref[...]
        return jnp.maximum(y, 0.0) if relu else y

    h = dense(x_ref[...], w0_ref, b0_ref)       # input_layer + relu (x already bf16)
    h = dense(h, w1_ref, b1_ref)                # first_hidden + relu
    h = dense(h, w1_ref, b1_ref)                # first_hidden AGAIN (matches reference forward)
    h = dense(h, w2_ref, b2_ref)                # second_hidden + relu
    h = dense(h, w3_ref, b3_ref)                # third_hidden + relu
    out = dense(h, wo_ref, bo_ref, relu=False)  # output layer, no relu / no sigmoid
    out_ref[...] = out.astype(out_ref.dtype)


def toxic_classifier_forward(inputs, packed, *, n_out=6, batch_tile=128):
    """inputs: (B, 1, D) float; packed: dict from pack_params (bf16 weights, padded lanes)."""
    # Single cast in the wrapper: the reference's .float(), then bf16 for the MXU.
    x = jnp.squeeze(inputs, axis=1).astype(jnp.bfloat16)      # (B, D)
    B, D = x.shape

    D_p = packed["w0"].shape[0]
    n_out_p = packed["wo"].shape[1]

    # Batch tile: big enough to keep the MXU busy, aligned for bf16 sublane packing.
    bt = _round_up(min(batch_tile, B), _BATCH_ALIGN)
    B_pad = _round_up(B, bt)
    if B_pad != B or D_p != D:
        x = jnp.pad(x, ((0, B_pad - B), (0, D_p - D)))

    grid = (B_pad // bt,)

    # Weights/biases are small and constant across the grid: full-tensor blocks with a
    # constant index_map -> Pallas keeps them resident (no per-step re-fetch).
    def full2(shape):
        return pl.BlockSpec(shape, lambda i: (0, 0))

    in_specs = [
        pl.BlockSpec((bt, D_p), lambda i: (i, 0)),                      # x tile
        full2(packed["w0"].shape), full2(packed["b0"].shape),           # input_layer
        full2(packed["w1"].shape), full2(packed["b1"].shape),           # first_hidden
        full2(packed["w2"].shape), full2(packed["b2"].shape),           # second_hidden
        full2(packed["w3"].shape), full2(packed["b3"].shape),           # third_hidden
        full2(packed["wo"].shape), full2(packed["bo"].shape),           # output
    ]
    # Lane-dense output (128 lanes); the logical 6 columns are sliced out below.
    out_specs = pl.BlockSpec((bt, n_out_p), lambda i: (i, 0))

    kernel = pl.pallas_call(
        _mlp_kernel,
        out_shape=jax.ShapeDtypeStruct((B_pad, n_out_p), jnp.float32),
        grid_spec=pltpu.PrefetchScalarGridSpec(
            num_scalar_prefetch=0,
            grid=grid,
            in_specs=in_specs,
            out_specs=out_specs,
        ),
        compiler_params=pltpu.CompilerParams(
            dimension_semantics=("parallel",),   # batch tiles shard across TCs on v7x
        ),
    )

    out_padded = kernel(
        x,
        packed["w0"], packed["b0"],
        packed["w1"], packed["b1"],
        packed["w2"], packed["b2"],
        packed["w3"], packed["b3"],
        packed["wo"], packed["bo"],
    )
    return out_padded[:B, :n_out]


def init_params(key, max_seq_len, emb_dim, hidden, n_out=6):
    """Deterministic synthetic params in logical shapes: w (in, out) f32, b (out,) f32."""
    D = max_seq_len * emb_dim
    keys = jax.random.split(key, 10)

    def linear(kw, kb, fan_in, fan_out):
        # PyTorch nn.Linear default init: U(-1/sqrt(fan_in), 1/sqrt(fan_in))
        bound = 1.0 / jnp.sqrt(jnp.float32(fan_in))
        w = jax.random.uniform(kw, (fan_in, fan_out), jnp.float32, -bound, bound)
        b = jax.random.uniform(kb, (fan_out,), jnp.float32, -bound, bound)
        return w, b

    w0, b0 = linear(keys[0], keys[1], D, hidden)
    w1, b1 = linear(keys[2], keys[3], hidden, hidden)
    w2, b2 = linear(keys[4], keys[5], hidden, hidden)
    w3, b3 = linear(keys[6], keys[7], hidden, hidden)
    wo, bo = linear(keys[8], keys[9], hidden, n_out)
    return dict(w0=w0, b0=b0, w1=w1, b1=b1, w2=w2, b2=b2,
                w3=w3, b3=b3, wo=wo, bo=bo)


def pack_params(p):
    """Zero-pad every feature dim to a multiple of 128 lanes and cast weights to bf16.

    Zero padding is exact: padded hidden columns get bias 0 -> relu -> 0, and padded
    rows of the next weight are 0, so the logical outputs are unchanged.
    """
    D, hidden = p["w0"].shape
    n_out = p["wo"].shape[1]
    D_p = _round_up(D, _LANE)
    h_p = _round_up(hidden, _LANE)
    o_p = _round_up(n_out, _LANE)

    def pack(w, b, rows_p, cols_p):
        fi, fo = w.shape
        w_p = jnp.pad(w, ((0, rows_p - fi), (0, cols_p - fo))).astype(jnp.bfloat16)
        b_p = jnp.pad(b.reshape(1, -1), ((0, 0), (0, cols_p - fo))).astype(jnp.float32)
        return w_p, b_p

    w0, b0 = pack(p["w0"], p["b0"], D_p, h_p)
    w1, b1 = pack(p["w1"], p["b1"], h_p, h_p)
    w2, b2 = pack(p["w2"], p["b2"], h_p, h_p)
    w3, b3 = pack(p["w3"], p["b3"], h_p, h_p)
    wo, bo = pack(p["wo"], p["bo"], h_p, o_p)
    return dict(w0=w0, b0=b0, w1=w1, b1=b1, w2=w2, b2=b2,
                w3=w3, b3=b3, wo=wo, bo=bo)


def reference_forward(inputs, p):
    """Pure-JAX reference with identical semantics and matching bf16-operand numerics."""
    bf16 = jnp.bfloat16
    x = jnp.squeeze(inputs, axis=1).astype(jnp.float32)

    def dense(h, w, b, relu=True):
        y = jnp.dot(h.astype(bf16), w.astype(bf16),
                    preferred_element_type=jnp.float32) + b
        return jnp.maximum(y, 0.0) if relu else y

    h = dense(x, p["w0"], p["b0"])
    h = dense(h, p["w1"], p["b1"])
    h = dense(h, p["w1"], p["b1"])     # first_hidden twice, as in the PyTorch forward
    h = dense(h, p["w2"], p["b2"])
    h = dense(h, p["w3"], p["b3"])
    return dense(h, p["wo"], p["bo"], relu=False)


if __name__ == "__main__":
    # Small shapes consistent with the module's forward; batch sized so the grid has
    # 2 parallel steps (uses both TensorCores on v7x, harmless on v5e/v6e).
    MAX_SEQ_LEN = 8
    EMB_DIM = 32
    HIDDEN = 64
    N_OUT = 6
    BATCH = 256
    D = MAX_SEQ_LEN * EMB_DIM

    key = jax.random.PRNGKey(0)
    k_params, k_x = jax.random.split(key)
    params = init_params(k_params, MAX_SEQ_LEN, EMB_DIM, HIDDEN, N_OUT)
    packed = pack_params(params)

    # Input matches the PyTorch call convention: (B, 1, max_seq_len*emb_dim).
    x = jax.random.normal(k_x, (BATCH, 1, D), dtype=jnp.float32)

    out = toxic_classifier_forward(x, packed, n_out=N_OUT, batch_tile=128)
    out = jax.block_until_ready(out)

    ref = reference_forward(x, params)
    assert out.shape == (BATCH, N_OUT)
    assert jnp.allclose(out, ref, atol=2e-3, rtol=2e-3), "mismatch vs JAX reference"

    print("KERNEL_OK")
</pallas_src>

<mosaic_0001>
module attributes {stable_mosaic.version = 11 : i64} {
  func.func @_mlp_kernel(%arg0: i32, %arg1: memref<128x256xbf16, #tpu.memory_space<vmem>>, %arg2: memref<256x128xbf16, #tpu.memory_space<vmem>>, %arg3: memref<1x128xf32, #tpu.memory_space<vmem>>, %arg4: memref<128x128xbf16, #tpu.memory_space<vmem>>, %arg5: memref<1x128xf32, #tpu.memory_space<vmem>>, %arg6: memref<128x128xbf16, #tpu.memory_space<vmem>>, %arg7: memref<1x128xf32, #tpu.memory_space<vmem>>, %arg8: memref<128x128xbf16, #tpu.memory_space<vmem>>, %arg9: memref<1x128xf32, #tpu.memory_space<vmem>>, %arg10: memref<128x128xbf16, #tpu.memory_space<vmem>>, %arg11: memref<1x128xf32, #tpu.memory_space<vmem>>, %arg12: memref<128x128xf32, #tpu.memory_space<vmem>>) attributes {dimension_semantics = [#tpu.dimension_semantics<parallel>], iteration_bounds = array<i64: 2>, scalar_prefetch = 0 : i64, scratch_operands = 0 : i64, tpu.core_type = #tpu.core_type<tc>, window_params = [{transform_indices = @transform_0, window_bounds = array<i64: 128, 256>}, {pipeline_mode = #tpu.pipeline_mode<synchronous>, transform_indices = @transform_1, window_bounds = array<i64: 256, 128>}, {pipeline_mode = #tpu.pipeline_mode<synchronous>, transform_indices = @transform_2, window_bounds = array<i64: 1, 128>}, {pipeline_mode = #tpu.pipeline_mode<synchronous>, transform_indices = @transform_3, window_bounds = array<i64: 128, 128>}, {pipeline_mode = #tpu.pipeline_mode<synchronous>, transform_indices = @transform_4, window_bounds = array<i64: 1, 128>}, {pipeline_mode = #tpu.pipeline_mode<synchronous>, transform_indices = @transform_5, window_bounds = array<i64: 128, 128>}, {pipeline_mode = #tpu.pipeline_mode<synchronous>, transform_indices = @transform_6, window_bounds = array<i64: 1, 128>}, {pipeline_mode = #tpu.pipeline_mode<synchronous>, transform_indices = @transform_7, window_bounds = array<i64: 128, 128>}, {pipeline_mode = #tpu.pipeline_mode<synchronous>, transform_indices = @transform_8, window_bounds = array<i64: 1, 128>}, {pipeline_mode = #tpu.pipeline_mode<synchronous>, transform_indices = @transform_9, window_bounds = array<i64: 128, 128>}, {pipeline_mode = #tpu.pipeline_mode<synchronous>, transform_indices = @transform_10, window_bounds = array<i64: 1, 128>}, {transform_indices = @transform_11, window_bounds = array<i64: 128, 128>}]} {
    %c0 = arith.constant 0 : index
    %c0_0 = arith.constant 0 : index
    %0 = vector.load %arg1[%c0, %c0_0] : memref<128x256xbf16, #tpu.memory_space<vmem>>, vector<128x256xbf16>
    %c0_1 = arith.constant 0 : index
    %c0_2 = arith.constant 0 : index
    %1 = vector.load %arg2[%c0_1, %c0_2] : memref<256x128xbf16, #tpu.memory_space<vmem>>, vector<256x128xbf16>
    %cst = arith.constant dense<0.000000e+00> : vector<128x128xf32>
    %2 = tpu.matmul %0, %1, %cst {dimension_numbers = #tpu.dot_dimension_numbers<[1], [0], [0], [1], [0, 0, 1, 1], [], []>} : vector<128x256xbf16>, vector<256x128xbf16>, vector<128x128xf32> -> vector<128x128xf32>
    %c0_3 = arith.constant 0 : index
    %c0_4 = arith.constant 0 : index
    %3 = vector.load %arg3[%c0_3, %c0_4] : memref<1x128xf32, #tpu.memory_space<vmem>>, vector<1x128xf32>
    %4 = vector.broadcast %3 : vector<1x128xf32> to vector<128x128xf32>
    %5 = arith.addf %2, %4 : vector<128x128xf32>
    %cst_5 = arith.constant 0.000000e+00 : f32
    %6 = vector.broadcast %cst_5 : f32 to vector<128x128xf32>
    %7 = arith.maximumf %5, %6 : vector<128x128xf32>
    %8 = arith.truncf %7 : vector<128x128xf32> to vector<128x128xbf16>
    %c0_6 = arith.constant 0 : index
    %c0_7 = arith.constant 0 : index
    %9 = vector.load %arg4[%c0_6, %c0_7] : memref<128x128xbf16, #tpu.memory_space<vmem>>, vector<128x128xbf16>
    %cst_8 = arith.constant dense<0.000000e+00> : vector<128x128xf32>
    %10 = tpu.matmul %8, %9, %cst_8 {dimension_numbers = #tpu.dot_dimension_numbers<[1], [0], [0], [1], [0, 0, 1, 1], [], []>} : vector<128x128xbf16>, vector<128x128xbf16>, vector<128x128xf32> -> vector<128x128xf32>
    %c0_9 = arith.constant 0 : index
    %c0_10 = arith.constant 0 : index
    %11 = vector.load %arg5[%c0_9, %c0_10] : memref<1x128xf32, #tpu.memory_space<vmem>>, vector<1x128xf32>
    %12 = vector.broadcast %11 : vector<1x128xf32> to vector<128x128xf32>
    %13 = arith.addf %10, %12 : vector<128x128xf32>
    %cst_11 = arith.constant 0.000000e+00 : f32
    %14 = vector.broadcast %cst_11 : f32 to vector<128x128xf32>
    %15 = arith.maximumf %13, %14 : vector<128x128xf32>
    %16 = arith.truncf %15 : vector<128x128xf32> to vector<128x128xbf16>
    %c0_12 = arith.constant 0 : index
    %c0_13 = arith.constant 0 : index
    %17 = vector.load %arg4[%c0_12, %c0_13] : memref<128x128xbf16, #tpu.memory_space<vmem>>, vector<128x128xbf16>
    %cst_14 = arith.constant dense<0.000000e+00> : vector<128x128xf32>
    %18 = tpu.matmul %16, %17, %cst_14 {dimension_numbers = #tpu.dot_dimension_numbers<[1], [0], [0], [1], [0, 0, 1, 1], [], []>} : vector<128x128xbf16>, vector<128x128xbf16>, vector<128x128xf32> -> vector<128x128xf32>
    %c0_15 = arith.constant 0 : index
    %c0_16 = arith.constant 0 : index
    %19 = vector.load %arg5[%c0_15, %c0_16] : memref<1x128xf32, #tpu.memory_space<vmem>>, vector<1x128xf32>
    %20 = vector.broadcast %19 : vector<1x128xf32> to vector<128x128xf32>
    %21 = arith.addf %18, %20 : vector<128x128xf32>
    %cst_17 = arith.constant 0.000000e+00 : f32
    %22 = vector.broadcast %cst_17 : f32 to vector<128x128xf32>
    %23 = arith.maximumf %21, %22 : vector<128x128xf32>
    %24 = arith.truncf %23 : vector<128x128xf32> to vector<128x128xbf16>
    %c0_18 = arith.constant 0 : index
    %c0_19 = arith.constant 0 : index
    %25 = vector.load %arg6[%c0_18, %c0_19] : memref<128x128xbf16, #tpu.memory_space<vmem>>, vector<128x128xbf16>
    %cst_20 = arith.constant dense<0.000000e+00> : vector<128x128xf32>
    %26 = tpu.matmul %24, %25, %cst_20 {dimension_numbers = #tpu.dot_dimension_numbers<[1], [0], [0], [1], [0, 0, 1, 1], [], []>} : vector<128x128xbf16>, vector<128x128xbf16>, vector<128x128xf32> -> vector<128x128xf32>
    %c0_21 = arith.constant 0 : index
    %c0_22 = arith.constant 0 : index
    %27 = vector.load %arg7[%c0_21, %c0_22] : memref<1x128xf32, #tpu.memory_space<vmem>>, vector<1x128xf32>
    %28 = vector.broadcast %27 : vector<1x128xf32> to vector<128x128xf32>
    %29 = arith.addf %26, %28 : vector<128x128xf32>
    %cst_23 = arith.constant 0.000000e+00 : f32
    %30 = vector.broadcast %cst_23 : f32 to vector<128x128xf32>
    %31 = arith.maximumf %29, %30 : vector<128x128xf32>
    %32 = arith.truncf %31 : vector<128x128xf32> to vector<128x128xbf16>
    %c0_24 = arith.constant 0 : index
    %c0_25 = arith.constant 0 : index
    %33 = vector.load %arg8[%c0_24, %c0_25] : memref<128x128xbf16, #tpu.memory_space<vmem>>, vector<128x128xbf16>
    %cst_26 = arith.constant dense<0.000000e+00> : vector<128x128xf32>
    %34 = tpu.matmul %32, %33, %cst_26 {dimension_numbers = #tpu.dot_dimension_numbers<[1], [0], [0], [1], [0, 0, 1, 1], [], []>} : vector<128x128xbf16>, vector<128x128xbf16>, vector<128x128xf32> -> vector<128x128xf32>
    %c0_27 = arith.constant 0 : index
    %c0_28 = arith.constant 0 : index
    %35 = vector.load %arg9[%c0_27, %c0_28] : memref<1x128xf32, #tpu.memory_space<vmem>>, vector<1x128xf32>
    %36 = vector.broadcast %35 : vector<1x128xf32> to vector<128x128xf32>
    %37 = arith.addf %34, %36 : vector<128x128xf32>
    %cst_29 = arith.constant 0.000000e+00 : f32
    %38 = vector.broadcast %cst_29 : f32 to vector<128x128xf32>
    %39 = arith.maximumf %37, %38 : vector<128x128xf32>
    %40 = arith.truncf %39 : vector<128x128xf32> to vector<128x128xbf16>
    %c0_30 = arith.constant 0 : index
    %c0_31 = arith.constant 0 : index
    %41 = vector.load %arg10[%c0_30, %c0_31] : memref<128x128xbf16, #tpu.memory_space<vmem>>, vector<128x128xbf16>
    %cst_32 = arith.constant dense<0.000000e+00> : vector<128x128xf32>
    %42 = tpu.matmul %40, %41, %cst_32 {dimension_numbers = #tpu.dot_dimension_numbers<[1], [0], [0], [1], [0, 0, 1, 1], [], []>} : vector<128x128xbf16>, vector<128x128xbf16>, vector<128x128xf32> -> vector<128x128xf32>
    %c0_33 = arith.constant 0 : index
    %c0_34 = arith.constant 0 : index
    %43 = vector.load %arg11[%c0_33, %c0_34] : memref<1x128xf32, #tpu.memory_space<vmem>>, vector<1x128xf32>
    %44 = vector.broadcast %43 : vector<1x128xf32> to vector<128x128xf32>
    %45 = arith.addf %42, %44 : vector<128x128xf32>
    %c0_35 = arith.constant 0 : index
    %c0_36 = arith.constant 0 : index
    %46 = vector.load %arg12[%c0_35, %c0_36] : memref<128x128xf32, #tpu.memory_space<vmem>>, vector<128x128xf32>
    tpu.vector_store %arg12[%c0_35, %c0_36], %45 {strides = array<i32>} : memref<128x128xf32, #tpu.memory_space<vmem>>, vector<128x128xf32>,
    return
  }
  func.func @transform_0(%arg0: i32) -> (i32, i32) {
    %c0_i32 = arith.constant 0 : i32
    %c0_i32_0 = arith.constant 0 : i32
    return %arg0, %c0_i32 : i32, i32
  }
  func.func @transform_1(%arg0: i32) -> (i32, i32) {
    %c0_i32 = arith.constant 0 : i32
    %c0_i32_0 = arith.constant 0 : i32
    %c0_i32_1 = arith.constant 0 : i32
    return %c0_i32, %c0_i32_0 : i32, i32
  }
  func.func @transform_2(%arg0: i32) -> (i32, i32) {
    %c0_i32 = arith.constant 0 : i32
    %c0_i32_0 = arith.constant 0 : i32
    %c0_i32_1 = arith.constant 0 : i32
    return %c0_i32, %c0_i32_0 : i32, i32
  }
  func.func @transform_3(%arg0: i32) -> (i32, i32) {
    %c0_i32 = arith.constant 0 : i32
    %c0_i32_0 = arith.constant 0 : i32
    %c0_i32_1 = arith.constant 0 : i32
    return %c0_i32, %c0_i32_0 : i32, i32
  }
  func.func @transform_4(%arg0: i32) -> (i32, i32) {
    %c0_i32 = arith.constant 0 : i32
    %c0_i32_0 = arith.constant 0 : i32
    %c0_i32_1 = arith.constant 0 : i32
    return %c0_i32, %c0_i32_0 : i32, i32
  }
  func.func @transform_5(%arg0: i32) -> (i32, i32) {
    %c0_i32 = arith.constant 0 : i32
    %c0_i32_0 = arith.constant 0 : i32
    %c0_i32_1 = arith.constant 0 : i32
    return %c0_i32, %c0_i32_0 : i32, i32
  }
  func.func @transform_6(%arg0: i32) -> (i32, i32) {
    %c0_i32 = arith.constant 0 : i32
    %c0_i32_0 = arith.constant 0 : i32
    %c0_i32_1 = arith.constant 0 : i32
    return %c0_i32, %c0_i32_0 : i32, i32
  }
  func.func @transform_7(%arg0: i32) -> (i32, i32) {
    %c0_i32 = arith.constant 0 : i32
    %c0_i32_0 = arith.constant 0 : i32
    %c0_i32_1 = arith.constant 0 : i32
    return %c0_i32, %c0_i32_0 : i32, i32
  }
  func.func @transform_8(%arg0: i32) -> (i32, i32) {
    %c0_i32 = arith.constant 0 : i32
    %c0_i32_0 = arith.constant 0 : i32
    %c0_i32_1 = arith.constant 0 : i32
    return %c0_i32, %c0_i32_0 : i32, i32
  }
  func.func @transform_9(%arg0: i32) -> (i32, i32) {
    %c0_i32 = arith.constant 0 : i32
    %c0_i32_0 = arith.constant 0 : i32
    %c0_i32_1 = arith.constant 0 : i32
    return %c0_i32, %c0_i32_0 : i32, i32
  }
  func.func @transform_10(%arg0: i32) -> (i32, i32) {
    %c0_i32 = arith.constant 0 : i32
    %c0_i32_0 = arith.constant 0 : i32
    %c0_i32_1 = arith.constant 0 : i32
    return %c0_i32, %c0_i32_0 : i32, i32
  }
  func.func @transform_11(%arg0: i32) -> (i32, i32) {
    %c0_i32 = arith.constant 0 : i32
    %c0_i32_0 = arith.constant 0 : i32
    return %arg0, %c0_i32 : i32, i32
  }
}

</mosaic_0001>

<bundles_post_ra>
// kernel: tpu_custom_call.1
= control target key start
LH: loop header
LB: loop body
LE: loop exit
PB: predicated region body
PF: predicated region fallthrough
CT: control target
= control target key end

     0   :  { %s3255_s0 = inlined_call_operand.hbm [shape: bf16[256,256], index: 0, kind: input, shape index: {}]   ;;  %s3256_s1 = inlined_call_operand.hbm [shape: bf16[256,128], index: 1, kind: input, shape index: {}]   ;;  %s3257_s2 = inlined_call_operand.vmem [shape: f32[1,128], index: 2, kind: input, shape index: {}]   ;;  %s3258_s3 = inlined_call_operand.hbm [shape: bf16[128,128], index: 3, kind: input, shape index: {}]   ;;  %s3259_s4 = inlined_call_operand.vmem [shape: f32[1,128], index: 4, kind: input, shape index: {}]   ;;  %s3260_s5 = inlined_call_operand.hbm [shape: bf16[128,128], index: 5, kind: input, shape index: {}]   ;;  %s3261_s6 = inlined_call_operand.vmem [shape: f32[1,128], index: 6, kind: input, shape index: {}]   ;;  %s3262_s7 = inlined_call_operand.hbm [shape: bf16[128,128], index: 7, kind: input, shape index: {}]   ;;  %s3263_s8 = inlined_call_operand.vmem [shape: f32[1,128], index: 8, kind: input, shape index: {}]   ;;  %s3264_s9 = inlined_call_operand.hbm [shape: bf16[128,128], index: 9, kind: input, shape index: {}]   ;;  %s3265_s10 = inlined_call_operand.vmem [shape: f32[1,128], index: 10, kind: input, shape index: {}]   ;;  %s3266_s11 = inlined_call_operand.hbm [shape: f32[256,128], index: 11, kind: output, shape index: {}]  }
   0x1   :  { %3271 = sst [smem:[#allocation19_spill]] %s3256_s1 }
   0x2   :  { %3272 = sst [smem:[#allocation20_spill]] %s3263_s8 }
   0x3   :  { %3273 = sst [smem:[#allocation21_spill]] %s3265_s10 }
   0x4   :  { %3274 = sst [smem:[#allocation22_spill]] %s3266_s11 }
   0x5   :  { %16 = vsyncpa [#allocation3], 0 }
   0x6   :  { %18 = vsyncpa [#allocation3 + $0x1], 0 }
   0x7   :  { %19 = vsyncpa [#allocation6], 0 }
   0x8   :  { %20 = vsyncpa [#allocation9], 0 }
   0x9   :  { %21 = vsyncpa [#allocation12], 0 }
   0xa   :  { %22 = vsyncpa [#allocation4], 0 }
   0xb   :  { %24 = vsyncpa [#allocation4 + $0x1], 0  ;;  %s2765_s17 = smov 0   ;;  %s2767_s18 = smov 0  }
   0xc   :  { %s2769_s19 = smov 0   ;;  %s2771_s20 = smov 0  }
   0xd LB: > { %s2692_s21 = smov [#allocation5]   ;;  %s2786_s23 = sadd.s32 4294967295, %s2690_s20   ;;  %s2690_s20 = sphi %s2771_s20, %s3300_s20   ;;  %s2686_s19 = sphi %s2769_s19, %s3299_s19   ;;  %s2682_s18 = sphi %s2767_s18, %s3298_s18   ;;  %s2678_s17 = sphi %s2765_s17, %s3297_s17  }
   0xe   : > { %s309_s22 = sshll.u32 %s2692_s21, 4  ;;  %p1851_p0 = scmp.ge.s32.totalorder %s2690_s20, 1  ;;  %s2791_s22 = int_to_ptr.vmem [resolvable:$true] %s309_s22 }
   0xf   : > { %p3268_p1 = scmp.eq.s32.totalorder %s2786_s23, 0  ;;  %p297_p2 = scmp.lt.s32.totalorder %s2690_s20, 3 }
  0x10   : > { %s2693_s25 = smov [#allocation8]   ;;  %s2694_s28 = smov [#allocation7]  }
  0x11   : > { %p2793_p3 = pnand %p1851_p0, %p297_p2  ;;  %s341_s26 = sshll.u32 %s2693_s25, 4  ;;  %s2806_s26 = int_to_ptr.vmem [resolvable:$true] %s341_s26 }
  0x12   : > { %s325_s29 = sshll.u32 %s2694_s28, 4  ;;  %s3277_s1 = sld [smem:[#allocation19_spill]]  ;;  %s2808_s29 = int_to_ptr.vmem [resolvable:$true] %s325_s29 }
  0x13   : > { %s3275_s24 = scalar_select %p2793_p3, 1, 0 }
  0x14   : > { %p2291_p5 = pneg %p2793_p3 }
  0x16   : > { %p2802_p6 = pnand %p2291_p5, %p3268_p1 }
  0x18   : > { %s2442_s13 = scalar_lea.hbm %s3277_s1, 2048  ;;  %p2818_p8 = pneg %p2802_p6 }
  0x19   : > { %p2443_p7 = scmp.ne.s32.totalorder %s3277_s1, %s2442_s13  ;;  %p2449_p11 = scmp.lt.u32.totalorder %s2442_s13, %s3277_s1 }
  0x1b   : > { %p2445_p9 = pnand %p2818_p8, %p2443_p7 }
  0x1d   : > { %p2446_p10 = pneg %p2445_p9 }
  0x1f   : > { %p2451_p12 = pnand %p2449_p11, %p2446_p10 }
  0x21   : > { %2454 = shalt.err (!%p2451_p12)
}
  0x22   : > { %s2455_s28 = scalar_lea.vmem %s2791_s22, 2048  ;;  %p2463_p5 = scmp.lt.s32.totalorder %s2791_s22, %s2791_s22 }
  0x23   : > { %p2456_p13 = scmp.ne.s32.totalorder %s2791_s22, %s2455_s28  ;;  %p2464_p4 = scmp.lt.s32.totalorder %s2455_s28, %s2455_s28 }
  0x25   : > { %p2458_p0 = pnand %p2456_p13, %p2818_p8  ;;  %p2465_p7 = por %p2464_p4, %p2463_p5 }
  0x27   : > { %p2459_p2 = pneg %p2458_p0 }
  0x29   : > { %p2466_p9 = pnand %p2465_p7, %p2459_p2 }
  0x2b   : > { %2469 = shalt.err (!%p2466_p9)
}
  0x2c   : > { %s2695_s30 = smov 64   ;;  %s2696_s12 = smov 4  }
  0x2d   : > { %2294 = dma.hbm_to_vmem [thread:$0]  (!%p2802_p6), %s3277_s1, 2048, %s2791_s22, [#allocation6], %s2695_s30, %s2695_s30, %s2696_s12  }
  0x2e   : > { %s2470_s25 = scalar_lea.hbm %s3260_s5, 1024 }
  0x2f   : > { %p2471_p4 = scmp.ne.s32.totalorder %s3260_s5, %s2470_s25  ;;  %p2477_p12 = scmp.lt.u32.totalorder %s2470_s25, %s3260_s5 }
  0x31   : > { %p2473_p10 = pnand %p2471_p4, %p2818_p8 }
  0x33   : > { %p2474_p11 = pneg %p2473_p10 }
  0x35   : > { %p2479_p13 = pnand %p2477_p12, %p2474_p11 }
  0x37   : > { %2482 = shalt.err (!%p2479_p13)
}
  0x38   : > { %s2483_s22 = scalar_lea.vmem %s2806_s26, 1024  ;;  %p2491_p7 = scmp.lt.s32.totalorder %s2806_s26, %s2806_s26 }
  0x39   : > { %p2484_p0 = scmp.ne.s32.totalorder %s2806_s26, %s2483_s22  ;;  %p2492_p9 = scmp.lt.s32.totalorder %s2483_s22, %s2483_s22 }
  0x3b   : > { %p2486_p2 = pnand %p2484_p0, %p2818_p8  ;;  %p2493_p4 = por %p2492_p9, %p2491_p7 }
  0x3d   : > { %p2487_p5 = pneg %p2486_p2 }
  0x3f   : > { %p2494_p10 = pnand %p2493_p4, %p2487_p5 }
  0x41   : > { %2497 = shalt.err (!%p2494_p10)
}
  0x42   : > { %2300 = dma.hbm_to_vmem [thread:$0]  (!%p2802_p6), %s3260_s5, 1024, %s2806_s26, [#allocation9], %s2695_s30, %s2695_s30, %s2696_s12  }
  0x43   : > { %s2498_s14 = scalar_lea.hbm %s3258_s3, 1024 }
  0x44   : > { %p2499_p11 = scmp.ne.s32.totalorder %s3258_s3, %s2498_s14  ;;  %p2505_p0 = scmp.lt.u32.totalorder %s2498_s14, %s3258_s3 }
  0x46   : > { %p2501_p12 = pnand %p2499_p11, %p2818_p8 }
  0x48   : > { %p2502_p13 = pneg %p2501_p12 }
  0x4a   : > { %p2507_p2 = pnand %p2505_p0, %p2502_p13 }
  0x4c   : > { %2510 = shalt.err (!%p2507_p2)
}
  0x4d   : > { %s2511_s26 = scalar_lea.vmem %s2808_s29, 1024  ;;  %p2519_p4 = scmp.lt.s32.totalorder %s2808_s29, %s2808_s29 }
  0x4e   : > { %p2512_p5 = scmp.ne.s32.totalorder %s2808_s29, %s2511_s26  ;;  %p2520_p10 = scmp.lt.s32.totalorder %s2511_s26, %s2511_s26 }
  0x50   : > { %p2514_p7 = pnand %p2512_p5, %p2818_p8  ;;  %p2521_p11 = por %p2520_p10, %p2519_p4 }
  0x52   : > { %p2515_p9 = pneg %p2514_p7 }
  0x54   : > { %p2522_p12 = pnand %p2521_p11, %p2515_p9 }
  0x56   : > { %2525 = shalt.err (!%p2522_p12)
}
  0x57   : > { %2297 = dma.hbm_to_vmem [thread:$0]  (!%p2802_p6), %s3258_s3, 1024, %s2808_s29, [#allocation6], %s2695_s30, %s2695_s30, %s2696_s12  }
  0x58   : > { %s2697_s10 = smov [#allocation10]   ;;  %s2698_s13 = smov [#allocation11]  }
  0x59   : > { %s357_s11 = sshll.u32 %s2697_s10, 4  ;;  %s373_s14 = sshll.u32 %s2698_s13, 4  ;;  %s358_s11 = int_to_ptr.vmem [resolvable:$true] %s357_s11  ;;  %s374_s14 = int_to_ptr.vmem [resolvable:$true] %s373_s14 }
  0x5a   : > { %s2526_s25 = scalar_lea.hbm %s3262_s7, 1024 }
  0x5b   : > { %p2527_p13 = scmp.ne.s32.totalorder %s3262_s7, %s2526_s25  ;;  %p2533_p5 = scmp.lt.u32.totalorder %s2526_s25, %s3262_s7 }
  0x5d   : > { %p2529_p0 = pnand %p2527_p13, %p2818_p8 }
  0x5f   : > { %p2530_p2 = pneg %p2529_p0 }
  0x61   : > { %p2535_p7 = pnand %p2533_p5, %p2530_p2 }
  0x63   : > { %2538 = shalt.err (!%p2535_p7)
}
  0x64   : > { %s2539_s29 = scalar_lea.vmem %s358_s11, 1024  ;;  %p2547_p11 = scmp.lt.s32.totalorder %s358_s11, %s358_s11 }
  0x65   : > { %p2540_p9 = scmp.ne.s32.totalorder %s358_s11, %s2539_s29  ;;  %p2548_p12 = scmp.lt.s32.totalorder %s2539_s29, %s2539_s29 }
  0x67   : > { %p2542_p4 = pnand %p2540_p9, %p2818_p8  ;;  %p2549_p1 = por %p2548_p12, %p2547_p11 }
  0x69   : > { %p2543_p10 = pneg %p2542_p4 }
  0x6b   : > { %p2550_p3 = pnand %p2549_p1, %p2543_p10 }
  0x6d   : > { %2553 = shalt.err (!%p2550_p3)
}
  0x6e   : > { %2303 = dma.hbm_to_vmem [thread:$0]  (!%p2802_p6), %s3262_s7, 1024, %s358_s11, [#allocation9], %s2695_s30, %s2695_s30, %s2696_s12  }
  0x6f   : > { %s2554_s15 = scalar_lea.hbm %s3264_s9, 1024 }
  0x70   : > { %p2555_p1 = scmp.ne.s32.totalorder %s3264_s9, %s2554_s15  ;;  %p2561_p0 = scmp.lt.u32.totalorder %s2554_s15, %s3264_s9 }
  0x72   : > { %p2557_p3 = pnand %p2555_p1, %p2818_p8 }
  0x74   : > { %p2558_p13 = pneg %p2557_p3 }
  0x76   : > { %p2563_p2 = pnand %p2561_p0, %p2558_p13 }
  0x78   : > { %2566 = shalt.err (!%p2563_p2)
}
  0x79   : > { %s2567_s22 = scalar_lea.vmem %s374_s14, 1024  ;;  %p2575_p4 = scmp.lt.s32.totalorder %s374_s14, %s374_s14 }
  0x7a   : > { %p2568_p5 = scmp.ne.s32.totalorder %s374_s14, %s2567_s22  ;;  %p2576_p10 = scmp.lt.s32.totalorder %s2567_s22, %s2567_s22 }
  0x7c   : > { %p2570_p7 = pnand %p2568_p5, %p2818_p8  ;;  %p2577_p11 = por %p2576_p10, %p2575_p4 }
  0x7e   : > { %p2571_p9 = pneg %p2570_p7 }
  0x80   : > { %p2578_p12 = pnand %p2577_p11, %p2571_p9 }
  0x82   : > { %2581 = shalt.err (!%p2578_p12)
}
  0x83   : > { %2306 = dma.hbm_to_vmem [thread:$0]  (!%p2802_p6), %s3264_s9, 1024, %s374_s14, [#allocation12], %s2695_s30, %s2695_s30, %s2696_s12  }
  0x84   : > { %s1850_s27 = sadd.s32 4294967294, %s2690_s20   ;;  %s2938_s16 = sadd.s32 1, %s2690_s20  }
  0x85   : > { %s37_s1 = sadd.s32 1, %s2686_s19  ;;  %s34_s8 = ssub.s32 %s2690_s20, %s2938_s16 }
  0x86   : > { %p44_p8 = scmp.ne.s32.totalorder %s2686_s19, %s2682_s18  ;;  %p35_p1 = scmp.eq.s32.totalorder %s34_s8, 0 }
  0x87   : > { %p45_p3 = scmp.eq.s32.totalorder %s2690_s20, 0  ;;  %p50_p13 = scmp.ne.s32.totalorder %s2682_s18, %s2678_s17 }
  0x88   : > { %p284_p0 = scmp.eq.s32.totalorder %s2786_s23, 1  ;;  %p3279_p5 = scmp.eq.s32.totalorder %s2786_s23, 0 }
  0x89   : > { %s2950_s10 = scalar_select %p35_p1, %s2686_s19, %s37_s1  }
  0x8a   : > { %p46_p2 = por %p45_p3, %p44_p8  ;;  %p2954_p7 = por %p3279_p5, %p50_p13 }
  0x8b   : > { %p2958_p6 = por %p284_p0, %p44_p8  ;;  %p290_p9 = scmp.eq.s32.totalorder %s1850_s27, 1 }
  0x8c   : > { %p2320_p4 = scmp.lt.s32.totalorder %s2690_s20, 2  ;;  %s390_s12 = sand.u32 1, %s2686_s19  }
  0x8d   : > { %s3281_s30 = scalar_select %p2958_p6, 1, 0 }
  0x8e   : > { %p2964_p10 = por %p290_p9, %p50_p13  ;;  %s1858_s15 = sshll.u32 %s390_s12, 7 }
  0x8f   : > { %s1945_s21 = sshll.u32 %s2690_s20, 11  ;;  %s394_s22 = scalar_lea.vmem [#allocation2], %s1858_s15 }
  0x90   : > { %s3282_s14 = scalar_select %p2964_p10, 1, 0 }
  0x91   : > { %s2972_s26 = scalar_lea.hbm %s3255_s0, %s1945_s21  ;;  %s402_s11 = sshll.u32 %s394_s22, 4  ;;  %s2978_s11 = int_to_ptr.vmem [resolvable:$true] %s402_s11 }
  0x92   : > { %p2974_p11 = pnand %p2320_p4, %p46_p2  ;;  %s2980_s27 = scalar_lea.sflag [#allocation3], %s390_s12 }
  0x93   : > { %s2582_s1 = scalar_lea.hbm %s2972_s26, 2048  ;;  %s2587_s21 = scalar_lea.hbm %s3255_s0, 4096 }
  0x94   : > { %p2583_p12 = scmp.ne.s32.totalorder %s2972_s26, %s2582_s1  ;;  %p2584_p8 = pneg %p2974_p11 }
  0x95   : > { %p2588_p13 = scmp.lt.u32.totalorder %s2972_s26, %s3255_s0  ;;  %p2589_p0 = scmp.lt.u32.totalorder %s2587_s21, %s2582_s1 }
  0x96   : > { %p2585_p1 = pnand %p2584_p8, %p2583_p12  ;;  %p2591_p5 = scmp.lt.u32.totalorder %s2582_s1, %s2972_s26 }
  0x97   : > { %p2590_p2 = por %p2589_p0, %p2588_p13 }
  0x98   : > { %p2586_p3 = pneg %p2585_p1 }
  0x99   : > { %p2592_p9 = por %p2591_p5, %p2590_p2 }
  0x9b   : > { %p2593_p4 = pnand %p2592_p9, %p2586_p3 }
  0x9d   : > { %2596 = shalt.err (!%p2593_p4)
}
  0x9e   : > { %s2597_s12 = scalar_lea.vmem %s2978_s11, 2048  ;;  %s2699_s22 = smov [#allocation2]  }
  0x9f   : > { %p2598_p12 = scmp.ne.s32.totalorder %s2978_s11, %s2597_s12  ;;  %s2602_s8 = sshll.u32 %s2699_s22, 4  ;;  %s2603_s8 = int_to_ptr.vmem [resolvable:$false] %s2602_s8 }
  0xa0   : > { %s2604_s15 = scalar_lea.vmem %s2603_s8, 4096  ;;  %p2605_p6 = scmp.lt.s32.totalorder %s2978_s11, %s2603_s8 }
  0xa1   : > { %p2600_p1 = pnand %p2598_p12, %p2584_p8  ;;  %p2606_p13 = scmp.lt.s32.totalorder %s2604_s15, %s2597_s12 }
  0xa3   : > { %p2601_p10 = pneg %p2600_p1  ;;  %p2607_p0 = por %p2606_p13, %p2605_p6 }
  0xa5   : > { %p2608_p2 = pnand %p2607_p0, %p2601_p10 }
  0xa7   : > { %2611 = shalt.err (!%p2608_p2)
}
  0xa8   : > { %s2700_s1 = smov 128   ;;  %s2701_s21 = smov 8  }
  0xa9   : > { %2310 = dma.hbm_to_vmem [thread:$0]  (!%p2974_p11), %s2972_s26, 2048, %s2978_s11, %s2980_s27, %s2700_s1, %s2700_s1, %s2701_s21  }
  0xaa   : > { %p3284_p8 = scmp.ne.s32.totalorder %s3275_s24, 0 }
  0xab   : > { %s3011_s25 = sand.u32 (!%p3284_p8), 1, %s2682_s18  }
  0xac   : > { %414 = sbr.rel (%p3284_p8) target bundleno = 1622 (0x656), region = 64  ;;  %s1863_s28 = sshll.u32 (!%p3284_p8), %s3011_s25, 7 }
  0xad   : > { %s417_s12 = scalar_lea.sflag (!%p3284_p8), [#allocation3], %s3011_s25  ;;  %s3017_s22 = scalar_lea.vmem (!%p3284_p8), [#allocation2], %s1863_s28 }
  0xb3   : > { %2657 = dma.done.wait (%p2954_p7), %s417_s12, 2048  }
  0xb4   : > { %2659 = vsyncadd (%p2954_p7), %s417_s12, 4294965248  ;;  %p3285_p6 = scmp.eq.s32.totalorder %s2786_s23, 0 }
  0xb6   : > { %2661 = dma.done.wait (%p3285_p6), [#allocation6], 3072   ;;  %p3286_p10 = pmov %p3285_p6 }
  0xb7   : > { %p3287_p11 = pmov %p3285_p6 }
  0xb8   : > { %2663 = vsyncadd (%p3286_p10), [#allocation6], 4294964224 }
  0xb9   : > { %2665 = dma.done.wait (%p3287_p11), [#allocation9], 2048   ;;  %p3288_p3 = pmov %p3285_p6 }
  0xbb   : > { %2667 = vsyncadd (%p3288_p3), [#allocation9], 4294965248  ;;  %p3289_p5 = pmov %p3288_p3 }
  0xbc   : > { %p3290_p9 = pmov %p3288_p3 }
  0xbd   : > { %2669 = dma.done.wait (%p3289_p5), [#allocation12], 1024  }
  0xbe   : > { %2671 = vsyncadd (%p3290_p9), [#allocation12], 4294966272  ;;  %v2370_v0 = vld [vmem:[#allocation5 + $0x40] sm:$0xff]   ;;  %v2372_v2 = vld [vmem:[#allocation5 + $0x48] sm:$0xff]   ;;  %s3291_s1 = sld [smem:[#allocation20_spill]]  ;;  %s3186_s24 = scalar_lea.vmem [#allocation13], %s1863_s28 }
  0xbf   : > { %v2371_v1 = vld [vmem:[#allocation5] sm:$0xff]   ;;  %1947 = vmatprep.subr.bf16.mxu0 %v2370_v0  ;;  %v2373_v3 = vld [vmem:[#allocation5 + $0x8] sm:$0xff]   ;;  %v2374_v4 = vld [vmem:[#allocation5 + $0x50] sm:$0xff]   ;;  %s1946_s28 = sshll.u32 %s2786_s23, 11  ;;  %s1729_s13 = sshll.u32 %s3186_s24, 4  ;;  %s3208_s13 = int_to_ptr.vmem [resolvable:$true] %s1729_s13 }
  0xc0   : > { %1948 = vmatpush3.bf16.msra.mxu0 %v2371_v1  ;;  %v2375_v5 = vld [vmem:[#allocation5 + $0x10] sm:$0xff]   ;;  %v2376_v6 = vld [vmem:[#allocation5 + $0x58] sm:$0xff]   ;;  %v2378_v8 = vld [vmem:[#allocation5 + $0x60] sm:$0xff]   ;;  %s3293_s29 = sld [smem:[#allocation22_spill]]  ;;  %s1716_s23 = scalar_lea.sflag [#allocation4], %s3011_s25 }
  0xc1   : > { %1949 = vmatprep.subr.bf16.mxu0 %v2372_v2  ;;  %v2377_v7 = vld [vmem:[#allocation5 + $0x18] sm:$0xff]   ;;  %v2379_v9 = vld [vmem:[#allocation5 + $0x20] sm:$0xff]   ;;  %v2380_v10 = vld [vmem:[#allocation5 + $0x68] sm:$0xff]   ;;  %s2612_s8 = scalar_lea.vmem %s3208_s13, 2048  ;;  %p3294_p4 = scmp.ne.s32.totalorder %s3281_s30, 0 }
  0xc2   : > { %v2388_v11 = vld [vmem:[%s3017_s22 + $0x4] ss:$8 sps:$4 sm:$0xff]   ;;  %v2382_v13 = vld [vmem:[#allocation5 + $0x70] sm:$0xff]   ;;  %v2384_v15 = vld [vmem:[#allocation5 + $0x78] sm:$0xff]   ;;  %p2613_p7 = scmp.ne.s32.totalorder %s3208_s13, %s2612_s8  ;;  %s2702_s15 = smov [#allocation13]  }
  0xc3   : > { %v2381_v12 = vld [vmem:[#allocation5 + $0x28] sm:$0xff]   ;;  %745 = vmatprep.mubr.bf16.mxu0 %v2388_v11  ;;  %v2383_v14 = vld [vmem:[#allocation5 + $0x30] sm:$0xff]   ;;  %v2385_v16 = vld [vmem:[#allocation5 + $0x38] sm:$0xff]  }
  0xc4   : > { %1950 = vmatpush3.bf16.msra.mxu0 %v2373_v3  ;;  %v3036_v17 = vld [vmem:[#allocation7] sm:$0xff]   ;;  %v3039_v19 = vld [vmem:[#allocation7 + $0x8] sm:$0xff]   ;;  %v2389_v20 = vld [vmem:[%s3017_s22 + $0x14] ss:$8 sps:$4 sm:$0xff]   ;;  %p2614_p12 = pnand %p2613_p7, %p3294_p4 }
  0xc5   : > { %1951 = vmatprep.subr.bf16.mxu0 %v2374_v4  ;;  %v2386_v18 = vld [vmem:[%s3017_s22] ss:$8 sps:$4 sm:$0xff]   ;;  %2091 = vmatprep.subr.bf16.mxu1 %v3036_v17  ;;  %v3043_v21 = vld [vmem:[#allocation7 + $0x10] sm:$0xff]   ;;  %v2392_v23 = vld [vmem:[%s3017_s22 + $0x24] ss:$8 sps:$4 sm:$0xff]  }
  0xc6   : > { %2092 = vmatpush3.bf16.msra.mxu1 %v3036_v17  ;;  %v2391_v22 = vld [vmem:[%s3017_s22 + $0x10] ss:$8 sps:$4 sm:$0xff]   ;;  %v2394_v24 = vld [vmem:[%s3017_s22 + $0x20] ss:$8 sps:$4 sm:$0xff]   ;;  %v2395_v25 = vld [vmem:[%s3017_s22 + $0x34] ss:$8 sps:$4 sm:$0xff]   ;;  %s3206_s27 = scalar_lea.hbm %s3293_s29, %s1946_s28  ;;  %p2615_p1 = pneg %p2614_p12 }
  0xc7   : > { %2093 = vmatprep.subr.bf16.mxu1 %v3039_v19  ;;  %v2397_v26 = vld [vmem:[%s3017_s22 + $0x30] ss:$8 sps:$4 sm:$0xff]   ;;  %v2398_v27 = vld [vmem:[%s3017_s22 + $0x44] ss:$8 sps:$4 sm:$0xff]   ;;  %v2400_v28 = vld [vmem:[%s3017_s22 + $0x40] ss:$8 sps:$4 sm:$0xff]  }
  0xc8   : > { %1952 = vmatpush3.bf16.msra.mxu0 %v2375_v5  ;;  %v2401_v29 = vld [vmem:[%s3017_s22 + $0x54] ss:$8 sps:$4 sm:$0xff]   ;;  %v2403_v30 = vld [vmem:[%s3017_s22 + $0x50] ss:$8 sps:$4 sm:$0xff]   ;;  %v2404_v31 = vld [vmem:[%s3017_s22 + $0x64] ss:$8 sps:$4 sm:$0xff]  }
  0xc9   : > { %1953 = vmatprep.subr.bf16.mxu0 %v2376_v6  ;;  %v2406_v32 = vld [vmem:[%s3017_s22 + $0x60] ss:$8 sps:$4 sm:$0xff]   ;;  %v2407_v33 = vld [vmem:[%s3017_s22 + $0x74] ss:$8 sps:$4 sm:$0xff]   ;;  %v2409_v34 = vld [vmem:[%s3017_s22 + $0x70] ss:$8 sps:$4 sm:$0xff]  }
  0xca   : > { %2094 = vmatpush3.bf16.msra.mxu1 %v3039_v19  ;;  %v3063_v35 = vld [vmem:[#allocation7 + $0x18] sm:$0xff]   ;;  %v3067_v36 = vld [vmem:[#allocation7 + $0x20] sm:$0xff]   ;;  %v3071_v37 = vld [vmem:[#allocation7 + $0x28] sm:$0xff]   ;;  %s3292_s22 = sld [smem:[#allocation21_spill]] }
  0xcb   : > { %2095 = vmatprep.subr.bf16.mxu1 %v3043_v21  ;;  %v3075_v38 = vld [vmem:[#allocation7 + $0x30] sm:$0xff]   ;;  %v3079_v39 = vld [vmem:[#allocation7 + $0x38] sm:$0xff]   ;;  %v3087_v42 = vld [vmem:[%s3257_s2] ss:$0 sm:$0xff] }
  0xcc   : > { %1954 = vmatpush3.bf16.msra.mxu0 %v2377_v7 }
  0xcd   : > { %1955 = vmatprep.subr.bf16.mxu0 %v2378_v8 }
  0xce   : > { %2096 = vmatpush3.bf16.msra.mxu1 %v3043_v21 }
  0xcf   : > { %2097 = vmatprep.subr.bf16.mxu1 %v3063_v35 }
  0xd0   : > { %1956 = vmatpush3.bf16.msra.mxu0 %v2379_v9 }
  0xd1   : > { %1957 = vmatprep.subr.bf16.mxu0 %v2380_v10 }
  0xd2   : > { %2098 = vmatpush3.bf16.msra.mxu1 %v3063_v35 }
  0xd3   : > { %2099 = vmatprep.subr.bf16.mxu1 %v3067_v36 }
  0xd4   : > { %1958 = vmatpush3.bf16.msra.mxu0 %v2381_v12 }
  0xd5   : > { %1959 = vmatprep.subr.bf16.mxu0 %v2382_v13 }
  0xd6   : > { %2100 = vmatpush3.bf16.msra.mxu1 %v3067_v36 }
  0xd7   : > { %2101 = vmatprep.subr.bf16.mxu1 %v3071_v37 }
  0xd8   : > { %1960 = vmatpush3.bf16.msra.mxu0 %v2383_v14 }
  0xd9   : > { %1961 = vmatprep.subr.bf16.mxu0 %v2384_v15 }
  0xda   : > { %2102 = vmatpush3.bf16.msra.mxu1 %v3071_v37 }
  0xdb   : > { %2103 = vmatprep.subr.bf16.mxu1 %v3075_v38 }
  0xdc   : > { %1962 = vmatpush3.bf16.msra.mxu0 %v2385_v16 }
  0xde   : > { %2104 = vmatpush3.bf16.msra.mxu1 %v3075_v38 }
  0xdf   : > { %746 = vmatmul.mubr.bf16.vlgmr.msra.gmra.mrb[0].mxu0 %v2386_v18  ;;  %2105 = vmatprep.subr.bf16.mxu1 %v3079_v39 }
  0xe0   : > { %753 = vmatprep.mubr.bf16.mxu0 %v2389_v20 }
  0xe2   : > { %2106 = vmatpush3.bf16.msra.mxu1 %v3079_v39 }
  0xe3   : > { %2123 = vmatprep.subr.bf16.mxu1 %v3036_v17 }
  0xe7   : > { %754 = vmatmul.mubr.bf16.gmra.mrb[4].mxu0 %v2391_v22 }
  0xe8   : > { %761 = vmatprep.mubr.bf16.mxu0 %v2392_v23 }
  0xef   : > { %762 = vmatmul.mubr.bf16.gmra.mrb[8].mxu0 %v2394_v24 }
  0xf0   : > { %769 = vmatprep.mubr.bf16.mxu0 %v2395_v25 }
  0xf7   : > { %770 = vmatmul.mubr.bf16.gmra.mrb[12].mxu0 %v2397_v26 }
  0xf8   : > { %777 = vmatprep.mubr.bf16.mxu0 %v2398_v27 }
  0xff   : > { %778 = vmatmul.mubr.bf16.gmra.mrb[16].mxu0 %v2400_v28 }
 0x100   : > { %785 = vmatprep.mubr.bf16.mxu0 %v2401_v29 }
 0x107   : > { %786 = vmatmul.mubr.bf16.gmra.mrb[20].mxu0 %v2403_v30 }
 0x108   : > { %793 = vmatprep.mubr.bf16.mxu0 %v2404_v31 }
 0x10f   : > { %794 = vmatmul.mubr.bf16.gmra.mrb[24].mxu0 %v2406_v32 }
 0x110   : > { %801 = vmatprep.mubr.bf16.mxu0 %v2407_v33 }
 0x117   : > { %802 = vmatmul.mubr.bf16.gmra.mrb[28].mxu0 %v2409_v34 }
 0x1b2   : > { %v1963_v40 = vpop.f32.mrb[0].mxu0 }
 0x1b3   : > { %v1964_v41 = vpop.f32.mrb[1].mxu0 }
 0x1b4   : > { %v1965_v43 = vadd.f32 %v1964_v41, %v1963_v40  ;;  %v1966_v44 = vpop.f32.mrb[2].mxu0 }
 0x1b5   : > { %v1967_v45 = vpop.f32.mrb[3].mxu0 }
 0x1b6   : > { %v1968_v46 = vadd.f32 %v1967_v45, %v1966_v44  ;;  %v748_v47 = vadd.f32 %v1965_v43, %v3087_v42 }
 0x1b8   : > { %v751_v48 = vadd.f32 %v1968_v46, %v3087_v42  ;;  %v810_v50 = vmax.f32 %v748_v47, 0.0 }
 0x1ba   : > { %v1969_v49 = vpop.f32.mrb[4].mxu0  ;;  %v811_v51 = vmax.f32 %v751_v48, 0.0 }
 0x1bb   : > { %v1970_v52 = vpop.f32.mrb[5].mxu0 }
 0x1bc   : > { %v1971_v53 = vadd.f32 %v1970_v52, %v1969_v49  ;;  %v1972_v54 = vpop.f32.mrb[6].mxu0  ;;  %v826_v55 = vpack.c.bf16 %v811_v51, %v810_v50 }
 0x1bd   : > { %v1973_v56 = vpop.f32.mrb[7].mxu0 }
 0x1be   : > { %v756_v57 = vadd.f32 %v1971_v53, %v3087_v42  ;;  %v1974_v58 = vadd.f32 %v1973_v56, %v1972_v54  ;;  %2107 = vmatprep.mubr.bf16.mxu1 %v826_v55 }
 0x1c0   : > { %v759_v59 = vadd.f32 %v1974_v58, %v3087_v42  ;;  %v812_v60 = vmax.f32 %v756_v57, 0.0 }
 0x1c2   : > { %v813_v61 = vmax.f32 %v759_v59, 0.0  ;;  %v1975_v62 = vpop.f32.mrb[8].mxu0 }
 0x1c3   : > { %v1976_v63 = vpop.f32.mrb[9].mxu0 }
 0x1c4   : > { %v1977_v0 = vadd.f32 %v1976_v63, %v1975_v62  ;;  %v1978_v1 = vpop.f32.mrb[10].mxu0  ;;  %v827_v2 = vpack.c.bf16 %v813_v61, %v812_v60 }
 0x1c5   : > { %v1979_v3 = vpop.f32.mrb[11].mxu0 }
 0x1c6   : > { %v764_v4 = vadd.f32 %v1977_v0, %v3087_v42  ;;  %v1980_v5 = vadd.f32 %v1979_v3, %v1978_v1  ;;  %2108 = vmatmul.mubr.bf16.vlgmr.msra.gmra.mrb[0].mxu1 %v827_v2  ;;  %v2418_v2 = vld [vmem:[#allocation8] sm:$0xff]   ;;  %v2419_v3 = vld [vmem:[#allocation8 + $0x8] sm:$0xff]  }
 0x1c7   : > { %2124 = vmatpush3.bf16.msra.mxu1 %v3036_v17  ;;  %2155 = vmatprep.subr.bf16.mxu0 %v2418_v2 }
 0x1c8   : > { %v767_v6 = vadd.f32 %v1980_v5, %v3087_v42  ;;  %2125 = vmatprep.subr.bf16.mxu1 %v3039_v19  ;;  %v814_v7 = vmax.f32 %v764_v4, 0.0  ;;  %2156 = vmatpush3.bf16.msra.mxu0 %v2418_v2  ;;  %v2420_v4 = vld [vmem:[#allocation8 + $0x10] sm:$0xff]   ;;  %v2421_v5 = vld [vmem:[#allocation8 + $0x18] sm:$0xff]  }
 0x1c9   : > { %2157 = vmatprep.subr.bf16.mxu0 %v2419_v3  ;;  %v2425_v2 = vld [vmem:[#allocation8 + $0x38] sm:$0xff]  }
 0x1ca   : > { %v815_v8 = vmax.f32 %v767_v6, 0.0  ;;  %v1981_v9 = vpop.f32.mrb[12].mxu0  ;;  %v2422_v6 = vld [vmem:[#allocation8 + $0x20] sm:$0xff]  }
 0x1cb   : > { %v1982_v10 = vpop.f32.mrb[13].mxu0  ;;  %2126 = vmatpush3.bf16.msra.mxu1 %v3039_v19 }
 0x1cc   : > { %v1983_v11 = vadd.f32 %v1982_v10, %v1981_v9  ;;  %v1984_v12 = vpop.f32.mrb[14].mxu0  ;;  %v828_v13 = vpack.c.bf16 %v815_v8, %v814_v7  ;;  %2127 = vmatprep.subr.bf16.mxu1 %v3043_v21  ;;  %2158 = vmatpush3.bf16.msra.mxu0 %v2419_v3  ;;  %v2423_v7 = vld [vmem:[#allocation8 + $0x28] sm:$0xff]   ;;  %v2426_v3 = vld [vmem:[#allocation10] sm:$0xff]  }
 0x1cd   : > { %v1985_v14 = vpop.f32.mrb[15].mxu0  ;;  %2159 = vmatprep.subr.bf16.mxu0 %v2420_v4 }
 0x1ce   : > { %v772_v15 = vadd.f32 %v1983_v11, %v3087_v42  ;;  %v1986_v16 = vadd.f32 %v1985_v14, %v1984_v12  ;;  %2111 = vmatprep.mubr.bf16.mxu1 %v828_v13 }
 0x1cf   : > { %2128 = vmatpush3.bf16.msra.mxu1 %v3043_v21 }
 0x1d0   : > { %v775_v17 = vadd.f32 %v1986_v16, %v3087_v42  ;;  %2129 = vmatprep.subr.bf16.mxu1 %v3063_v35  ;;  %v816_v18 = vmax.f32 %v772_v15, 0.0  ;;  %2160 = vmatpush3.bf16.msra.mxu0 %v2420_v4  ;;  %v2427_v4 = vld [vmem:[#allocation10 + $0x8] sm:$0xff]  }
 0x1d1   : > { %2161 = vmatprep.subr.bf16.mxu0 %v2421_v5 }
 0x1d2   : > { %v817_v20 = vmax.f32 %v775_v17, 0.0  ;;  %v1987_v22 = vpop.f32.mrb[16].mxu0 }
 0x1d3   : > { %v1988_v19 = vpop.f32.mrb[17].mxu0  ;;  %2130 = vmatpush3.bf16.msra.mxu1 %v3063_v35 }
 0x1d4   : > { %v1989_v23 = vadd.f32 %v1988_v19, %v1987_v22  ;;  %v1990_v24 = vpop.f32.mrb[18].mxu0  ;;  %v829_v25 = vpack.c.bf16 %v817_v20, %v816_v18  ;;  %2131 = vmatprep.subr.bf16.mxu1 %v3067_v36  ;;  %2162 = vmatpush3.bf16.msra.mxu0 %v2421_v5  ;;  %v2428_v5 = vld [vmem:[#allocation10 + $0x10] sm:$0xff]  }
 0x1d5   : > { %v1991_v26 = vpop.f32.mrb[19].mxu0  ;;  %2163 = vmatprep.subr.bf16.mxu0 %v2422_v6 }
 0x1d6   : > { %v780_v27 = vadd.f32 %v1989_v23, %v3087_v42  ;;  %v1992_v28 = vadd.f32 %v1991_v26, %v1990_v24  ;;  %2112 = vmatmul.mubr.bf16.gmra.mrb[4].mxu1 %v829_v25 }
 0x1d7   : > { %2132 = vmatpush3.bf16.msra.mxu1 %v3067_v36 }
 0x1d8   : > { %v783_v21 = vadd.f32 %v1992_v28, %v3087_v42  ;;  %2133 = vmatprep.subr.bf16.mxu1 %v3071_v37  ;;  %v818_v29 = vmax.f32 %v780_v27, 0.0  ;;  %2164 = vmatpush3.bf16.msra.mxu0 %v2422_v6  ;;  %v2429_v6 = vld [vmem:[#allocation10 + $0x18] sm:$0xff]  }
 0x1d9   : > { %2165 = vmatprep.subr.bf16.mxu0 %v2423_v7 }
 0x1da   : > { %v819_v30 = vmax.f32 %v783_v21, 0.0  ;;  %v1993_v31 = vpop.f32.mrb[20].mxu0 }
 0x1db   : > { %v1994_v32 = vpop.f32.mrb[21].mxu0  ;;  %2134 = vmatpush3.bf16.msra.mxu1 %v3071_v37 }
 0x1dc   : > { %v1995_v33 = vadd.f32 %v1994_v32, %v1993_v31  ;;  %v1996_v34 = vpop.f32.mrb[22].mxu0  ;;  %v830_v35 = vpack.c.bf16 %v819_v30, %v818_v29  ;;  %2135 = vmatprep.subr.bf16.mxu1 %v3075_v38  ;;  %2166 = vmatpush3.bf16.msra.mxu0 %v2423_v7  ;;  %v2430_v7 = vld [vmem:[#allocation10 + $0x20] sm:$0xff]  }
 0x1dd   : > { %v1997_v40 = vpop.f32.mrb[23].mxu0 }
 0x1de   : > { %v788_v41 = vadd.f32 %v1995_v33, %v3087_v42  ;;  %v1998_v43 = vadd.f32 %v1997_v40, %v1996_v34  ;;  %2115 = vmatprep.mubr.bf16.mxu1 %v830_v35 }
 0x1df   : > { %2136 = vmatpush3.bf16.msra.mxu1 %v3075_v38 }
 0x1e0   : > { %v791_v36 = vadd.f32 %v1998_v43, %v3087_v42  ;;  %2137 = vmatprep.subr.bf16.mxu1 %v3079_v39  ;;  %v820_v44 = vmax.f32 %v788_v41, 0.0 }
 0x1e2   : > { %v821_v45 = vmax.f32 %v791_v36, 0.0  ;;  %v1999_v46 = vpop.f32.mrb[24].mxu0 }
 0x1e3   : > { %v2000_v37 = vpop.f32.mrb[25].mxu0  ;;  %2138 = vmatpush3.bf16.msra.mxu1 %v3079_v39 }
 0x1e4   : > { %v2001_v47 = vadd.f32 %v2000_v37, %v1999_v46  ;;  %v2002_v48 = vpop.f32.mrb[26].mxu0  ;;  %v831_v49 = vpack.c.bf16 %v821_v45, %v820_v44  ;;  %2187 = vmatprep.subr.bf16.mxu1 %v2426_v3 }
 0x1e5   : > { %v2003_v50 = vpop.f32.mrb[27].mxu0 }
 0x1e6   : > { %v796_v51 = vadd.f32 %v2001_v47, %v3087_v42  ;;  %v2004_v52 = vadd.f32 %v2003_v50, %v2002_v48  ;;  %2116 = vmatmul.mubr.bf16.gmra.mrb[8].mxu1 %v831_v49 }
 0x1e8   : > { %v799_v38 = vadd.f32 %v2004_v52, %v3087_v42  ;;  %v822_v53 = vmax.f32 %v796_v51, 0.0 }
 0x1ea   : > { %v823_v54 = vmax.f32 %v799_v38, 0.0  ;;  %v2005_v55 = vpop.f32.mrb[28].mxu0 }
 0x1eb   : > { %v2006_v56 = vpop.f32.mrb[29].mxu0 }
 0x1ec   : > { %v2007_v57 = vadd.f32 %v2006_v56, %v2005_v55  ;;  %v2008_v58 = vpop.f32.mrb[30].mxu0  ;;  %v832_v59 = vpack.c.bf16 %v823_v54, %v822_v53 }
 0x1ed   : > { %v2009_v60 = vpop.f32.mrb[31].mxu0 }
 0x1ee   : > { %v804_v39 = vadd.f32 %v2007_v57, %v3087_v42  ;;  %v2010_v61 = vadd.f32 %v2009_v60, %v2008_v58  ;;  %2119 = vmatprep.mubr.bf16.mxu1 %v832_v59 }
 0x1f0   : > { %v807_v62 = vadd.f32 %v2010_v61, %v3087_v42  ;;  %v824_v63 = vmax.f32 %v804_v39, 0.0  ;;  %v3123_v42 = vld [vmem:[%s3259_s4] ss:$0 sm:$0xff] }
 0x1f2   : > { %v825_v0 = vmax.f32 %v807_v62, 0.0 }
 0x1f4   : > { %v833_v1 = vpack.c.bf16 %v825_v0, %v824_v63 }
 0x1f6   : > { %2120 = vmatmul.mubr.bf16.gmra.mrb[12].mxu1 %v833_v1  ;;  %v2424_v1 = vld [vmem:[#allocation8 + $0x30] sm:$0xff]  }
 0x1f7   : > { %2167 = vmatprep.subr.bf16.mxu0 %v2424_v1 }
 0x1f8   : > { %2168 = vmatpush3.bf16.msra.mxu0 %v2424_v1 }
 0x1f9   : > { %2169 = vmatprep.subr.bf16.mxu0 %v2425_v2 }
 0x1fc   : > { %2170 = vmatpush3.bf16.msra.mxu0 %v2425_v2  ;;  %v2432_v2 = vld [vmem:[#allocation10 + $0x30] sm:$0xff]  }
 0x299   : > { %v2109_v8 = vpop.f32.mrb[0].mxu1 }
 0x29a   : > { %v948_v9 = vadd.f32 %v2109_v8, %v3123_v42  ;;  %v939_v10 = vpop.f32.mrb[1].mxu1  ;;  %v2431_v8 = vld [vmem:[#allocation10 + $0x28] sm:$0xff]  }
 0x29b   : > { %v940_v11 = vadd.f32 %v3123_v42, %v939_v10  ;;  %v2110_v12 = vpop.f32.mrb[2].mxu1 }
 0x29c   : > { %v951_v13 = vadd.f32 %v2110_v12, %v3123_v42  ;;  %v942_v14 = vpop.f32.mrb[3].mxu1  ;;  %v1004_v16 = vmax.f32 %v948_v9, 0.0 }
 0x29d   : > { %v943_v15 = vadd.f32 %v3123_v42, %v942_v14  ;;  %v1002_v18 = vmax.f32 %v940_v11, 0.0 }
 0x29e   : > { %v1005_v17 = vmax.f32 %v951_v13, 0.0 }
 0x29f   : > { %v1003_v20 = vmax.f32 %v943_v15, 0.0 }
 0x2a0   : > { %v1019_v22 = vpack.c.bf16 %v1005_v17, %v1004_v16 }
 0x2a1   : > { %v1018_v19 = vpack.c.bf16 %v1003_v20, %v1002_v18 }
 0x2a3   : > { %2139 = vmatprep.mubr.bf16.mxu1 %v1018_v19 }
 0x2a4   : > { %2140 = vmatmul.mubr.bf16.vlgmr.msra.gmra.mrb[16].mxu1 %v1019_v22 }
 0x2a5   : > { %2188 = vmatpush3.bf16.msra.mxu1 %v2426_v3  ;;  %v2433_v3 = vld [vmem:[#allocation10 + $0x38] sm:$0xff]  }
 0x2a6   : > { %2189 = vmatprep.subr.bf16.mxu1 %v2427_v4 }
 0x2a9   : > { %v2113_v23 = vpop.f32.mrb[4].mxu1  ;;  %2190 = vmatpush3.bf16.msra.mxu1 %v2427_v4  ;;  %v2434_v4 = vld [vmem:[#allocation11] sm:$0xff]  }
 0x2aa   : > { %v964_v24 = vadd.f32 %v2113_v23, %v3123_v42  ;;  %v955_v25 = vpop.f32.mrb[5].mxu1  ;;  %2191 = vmatprep.subr.bf16.mxu1 %v2428_v5  ;;  %2219 = vmatprep.subr.bf16.mxu0 %v2434_v4 }
 0x2ab   : > { %v956_v26 = vadd.f32 %v3123_v42, %v955_v25  ;;  %v2114_v27 = vpop.f32.mrb[6].mxu1 }
 0x2ac   : > { %v967_v28 = vadd.f32 %v2114_v27, %v3123_v42  ;;  %v958_v21 = vpop.f32.mrb[7].mxu1  ;;  %v1008_v30 = vmax.f32 %v964_v24, 0.0 }
 0x2ad   : > { %v959_v29 = vadd.f32 %v3123_v42, %v958_v21  ;;  %v1006_v32 = vmax.f32 %v956_v26, 0.0  ;;  %2192 = vmatpush3.bf16.msra.mxu1 %v2428_v5  ;;  %v2435_v5 = vld [vmem:[#allocation11 + $0x8] sm:$0xff]  }
 0x2ae   : > { %v1009_v31 = vmax.f32 %v967_v28, 0.0  ;;  %2193 = vmatprep.subr.bf16.mxu1 %v2429_v6 }
 0x2af   : > { %v1007_v33 = vmax.f32 %v959_v29, 0.0 }
 0x2b0   : > { %v1021_v34 = vpack.c.bf16 %v1009_v31, %v1008_v30 }
 0x2b1   : > { %v1020_v35 = vpack.c.bf16 %v1007_v33, %v1006_v32  ;;  %2194 = vmatpush3.bf16.msra.mxu1 %v2429_v6  ;;  %v2437_v6 = vld [vmem:[#allocation11 + $0x18] sm:$0xff]  }
 0x2b2   : > { %2195 = vmatprep.subr.bf16.mxu1 %v2430_v7 }
 0x2b3   : > { %2143 = vmatprep.mubr.bf16.mxu1 %v1020_v35 }
 0x2b4   : > { %2144 = vmatmul.mubr.bf16.gmra.mrb[20].mxu1 %v1021_v34 }
 0x2b5   : > { %2196 = vmatpush3.bf16.msra.mxu1 %v2430_v7  ;;  %v2438_v7 = vld [vmem:[#allocation11 + $0x20] sm:$0xff]  }
 0x2b6   : > { %2197 = vmatprep.subr.bf16.mxu1 %v2431_v8 }
 0x2b9   : > { %v2117_v40 = vpop.f32.mrb[8].mxu1  ;;  %2198 = vmatpush3.bf16.msra.mxu1 %v2431_v8  ;;  %v2439_v8 = vld [vmem:[#allocation11 + $0x28] sm:$0xff]  }
 0x2ba   : > { %v980_v41 = vadd.f32 %v2117_v40, %v3123_v42  ;;  %v971_v43 = vpop.f32.mrb[9].mxu1  ;;  %2199 = vmatprep.subr.bf16.mxu1 %v2432_v2 }
 0x2bb   : > { %v972_v36 = vadd.f32 %v3123_v42, %v971_v43  ;;  %v2118_v44 = vpop.f32.mrb[10].mxu1 }
 0x2bc   : > { %v983_v45 = vadd.f32 %v2118_v44, %v3123_v42  ;;  %v974_v46 = vpop.f32.mrb[11].mxu1  ;;  %v1012_v47 = vmax.f32 %v980_v41, 0.0 }
 0x2bd   : > { %v975_v37 = vadd.f32 %v3123_v42, %v974_v46  ;;  %v1010_v49 = vmax.f32 %v972_v36, 0.0  ;;  %2200 = vmatpush3.bf16.msra.mxu1 %v2432_v2 }
 0x2be   : > { %v1013_v48 = vmax.f32 %v983_v45, 0.0  ;;  %2201 = vmatprep.subr.bf16.mxu1 %v2433_v3 }
 0x2bf   : > { %v1011_v50 = vmax.f32 %v975_v37, 0.0 }
 0x2c0   : > { %v1023_v51 = vpack.c.bf16 %v1013_v48, %v1012_v47 }
 0x2c1   : > { %v1022_v52 = vpack.c.bf16 %v1011_v50, %v1010_v49  ;;  %2202 = vmatpush3.bf16.msra.mxu1 %v2433_v3  ;;  %v2440_v3 = vld [vmem:[#allocation11 + $0x30] sm:$0xff]  }
 0x2c2   : > { %2251 = vmatprep.subr.bf16.mxu1 %v2434_v4 }
 0x2c3   : > { %2147 = vmatprep.mubr.bf16.mxu1 %v1022_v52 }
 0x2c4   : > { %2148 = vmatmul.mubr.bf16.gmra.mrb[24].mxu1 %v1023_v51 }
 0x2c9   : > { %v2121_v38 = vpop.f32.mrb[12].mxu1 }
 0x2ca   : > { %v996_v53 = vadd.f32 %v2121_v38, %v3123_v42  ;;  %v987_v54 = vpop.f32.mrb[13].mxu1 }
 0x2cb   : > { %v988_v55 = vadd.f32 %v3123_v42, %v987_v54  ;;  %v2122_v56 = vpop.f32.mrb[14].mxu1 }
 0x2cc   : > { %v999_v57 = vadd.f32 %v2122_v56, %v3123_v42  ;;  %v990_v58 = vpop.f32.mrb[15].mxu1  ;;  %v1016_v60 = vmax.f32 %v996_v53, 0.0 }
 0x2cd   : > { %v991_v59 = vadd.f32 %v3123_v42, %v990_v58  ;;  %v1014_v61 = vmax.f32 %v988_v55, 0.0 }
 0x2ce   : > { %v1017_v39 = vmax.f32 %v999_v57, 0.0 }
 0x2cf   : > { %v1015_v62 = vmax.f32 %v991_v59, 0.0 }
 0x2d0   : > { %v1025_v63 = vpack.c.bf16 %v1017_v39, %v1016_v60 }
 0x2d1   : > { %v1024_v0 = vpack.c.bf16 %v1015_v62, %v1014_v61 }
 0x2d3   : > { %2151 = vmatprep.mubr.bf16.mxu1 %v1024_v0 }
 0x2d4   : > { %2152 = vmatmul.mubr.bf16.gmra.mrb[28].mxu1 %v1025_v63 }
 0x377   : > { %v2141_v9 = vpop.f32.mrb[16].mxu1 }
 0x378   : > { %v1069_v10 = vadd.f32 %v2141_v9, %v3123_v42  ;;  %v1060_v11 = vpop.f32.mrb[17].mxu1  ;;  %v3160_v9 = vld [vmem:[%s3261_s6] ss:$0 sm:$0xff] }
 0x379   : > { %v1061_v12 = vadd.f32 %v3123_v42, %v1060_v11  ;;  %v2142_v13 = vpop.f32.mrb[18].mxu1 }
 0x37a   : > { %v1072_v14 = vadd.f32 %v2142_v13, %v3123_v42  ;;  %v1063_v15 = vpop.f32.mrb[19].mxu1  ;;  %v1125_v17 = vmax.f32 %v1069_v10, 0.0 }
 0x37b   : > { %v1064_v16 = vadd.f32 %v3123_v42, %v1063_v15  ;;  %v1123_v20 = vmax.f32 %v1061_v12, 0.0 }
 0x37c   : > { %v1126_v18 = vmax.f32 %v1072_v14, 0.0 }
 0x37d   : > { %v1124_v22 = vmax.f32 %v1064_v16, 0.0 }
 0x37e   : > { %v1140_v19 = vpack.c.bf16 %v1126_v18, %v1125_v17 }
 0x37f   : > { %v1139_v23 = vpack.c.bf16 %v1124_v22, %v1123_v20 }
 0x381   : > { %2171 = vmatprep.mubr.bf16.mxu0 %v1139_v23 }
 0x382   : > { %2172 = vmatmul.mubr.bf16.vlgmr.msra.gmra.mrb[32].mxu0 %v1140_v19 }
 0x383   : > { %2220 = vmatpush3.bf16.msra.mxu0 %v2434_v4 }
 0x384   : > { %2221 = vmatprep.subr.bf16.mxu0 %v2435_v5 }
 0x387   : > { %v2145_v24 = vpop.f32.mrb[20].mxu1  ;;  %2222 = vmatpush3.bf16.msra.mxu0 %v2435_v5 }
 0x388   : > { %v1085_v25 = vadd.f32 %v2145_v24, %v3123_v42  ;;  %v1076_v26 = vpop.f32.mrb[21].mxu1 }
 0x389   : > { %v1077_v27 = vadd.f32 %v3123_v42, %v1076_v26  ;;  %v2146_v28 = vpop.f32.mrb[22].mxu1 }
 0x38a   : > { %v1088_v21 = vadd.f32 %v2146_v28, %v3123_v42  ;;  %v1079_v29 = vpop.f32.mrb[23].mxu1  ;;  %v1129_v31 = vmax.f32 %v1085_v25, 0.0 }
 0x38b   : > { %v1080_v30 = vadd.f32 %v3123_v42, %v1079_v29  ;;  %v1127_v33 = vmax.f32 %v1077_v27, 0.0 }
 0x38c   : > { %v1130_v32 = vmax.f32 %v1088_v21, 0.0 }
 0x38d   : > { %v1128_v34 = vmax.f32 %v1080_v30, 0.0 }
 0x38e   : > { %v1142_v35 = vpack.c.bf16 %v1130_v32, %v1129_v31 }
 0x38f   : > { %v1141_v40 = vpack.c.bf16 %v1128_v34, %v1127_v33 }
 0x391   : > { %2175 = vmatprep.mubr.bf16.mxu0 %v1141_v40 }
 0x392   : > { %2176 = vmatmul.mubr.bf16.gmra.mrb[36].mxu0 %v1142_v35 }
 0x397   : > { %v2149_v41 = vpop.f32.mrb[24].mxu1 }
 0x398   : > { %v1101_v43 = vadd.f32 %v2149_v41, %v3123_v42  ;;  %v1092_v36 = vpop.f32.mrb[25].mxu1 }
 0x399   : > { %v1093_v44 = vadd.f32 %v3123_v42, %v1092_v36  ;;  %v2150_v45 = vpop.f32.mrb[26].mxu1 }
 0x39a   : > { %v1104_v46 = vadd.f32 %v2150_v45, %v3123_v42  ;;  %v1095_v37 = vpop.f32.mrb[27].mxu1  ;;  %v1133_v48 = vmax.f32 %v1101_v43, 0.0 }
 0x39b   : > { %v1096_v47 = vadd.f32 %v3123_v42, %v1095_v37  ;;  %v1131_v50 = vmax.f32 %v1093_v44, 0.0 }
 0x39c   : > { %v1134_v49 = vmax.f32 %v1104_v46, 0.0 }
 0x39d   : > { %v1132_v51 = vmax.f32 %v1096_v47, 0.0 }
 0x39e   : > { %v1144_v52 = vpack.c.bf16 %v1134_v49, %v1133_v48 }
 0x39f   : > { %v1143_v38 = vpack.c.bf16 %v1132_v51, %v1131_v50 }
 0x3a1   : > { %2179 = vmatprep.mubr.bf16.mxu0 %v1143_v38 }
 0x3a2   : > { %2180 = vmatmul.mubr.bf16.gmra.mrb[40].mxu0 %v1144_v52 }
 0x3a7   : > { %v2153_v53 = vpop.f32.mrb[28].mxu1 }
 0x3a8   : > { %v1117_v54 = vadd.f32 %v2153_v53, %v3123_v42  ;;  %v1108_v55 = vpop.f32.mrb[29].mxu1 }
 0x3a9   : > { %v1109_v56 = vadd.f32 %v3123_v42, %v1108_v55  ;;  %v2154_v57 = vpop.f32.mrb[30].mxu1 }
 0x3aa   : > { %v1120_v58 = vadd.f32 %v2154_v57, %v3123_v42  ;;  %v1111_v59 = vpop.f32.mrb[31].mxu1  ;;  %v1137_v39 = vmax.f32 %v1117_v54, 0.0 }
 0x3ab   : > { %v1112_v60 = vadd.f32 %v3123_v42, %v1111_v59  ;;  %v1135_v62 = vmax.f32 %v1109_v56, 0.0  ;;  %v2436_v42 = vld [vmem:[#allocation11 + $0x10] sm:$0xff]  }
 0x3ac   : > { %v1138_v61 = vmax.f32 %v1120_v58, 0.0  ;;  %2223 = vmatprep.subr.bf16.mxu0 %v2436_v42 }
 0x3ad   : > { %v1136_v63 = vmax.f32 %v1112_v60, 0.0  ;;  %2224 = vmatpush3.bf16.msra.mxu0 %v2436_v42 }
 0x3ae   : > { %v1146_v0 = vpack.c.bf16 %v1138_v61, %v1137_v39  ;;  %2225 = vmatprep.subr.bf16.mxu0 %v2437_v6 }
 0x3af   : > { %v1145_v1 = vpack.c.bf16 %v1136_v63, %v1135_v62 }
 0x3b1   : > { %2183 = vmatprep.mubr.bf16.mxu0 %v1145_v1  ;;  %2226 = vmatpush3.bf16.msra.mxu0 %v2437_v6 }
 0x3b2   : > { %2184 = vmatmul.mubr.bf16.gmra.mrb[44].mxu0 %v1146_v0  ;;  %2227 = vmatprep.subr.bf16.mxu0 %v2438_v7 }
 0x3b5   : > { %2228 = vmatpush3.bf16.msra.mxu0 %v2438_v7 }
 0x3b6   : > { %2229 = vmatprep.subr.bf16.mxu0 %v2439_v8 }
 0x3b9   : > { %2230 = vmatpush3.bf16.msra.mxu0 %v2439_v8 }
 0x3ba   : > { %2231 = vmatprep.subr.bf16.mxu0 %v2440_v3 }
 0x3bd   : > { %2232 = vmatpush3.bf16.msra.mxu0 %v2440_v3 }
 0x455   : > { %v2173_v10 = vpop.f32.mrb[32].mxu0 }
 0x456   : > { %v1261_v11 = vadd.f32 %v2173_v10, %v3160_v9  ;;  %v1252_v12 = vpop.f32.mrb[33].mxu0 }
 0x457   : > { %v1253_v13 = vadd.f32 %v3160_v9, %v1252_v12  ;;  %v2174_v14 = vpop.f32.mrb[34].mxu0 }
 0x458   : > { %v1264_v15 = vadd.f32 %v2174_v14, %v3160_v9  ;;  %v1255_v16 = vpop.f32.mrb[35].mxu0  ;;  %v1317_v18 = vmax.f32 %v1261_v11, 0.0 }
 0x459   : > { %v1256_v17 = vadd.f32 %v3160_v9, %v1255_v16  ;;  %v1315_v22 = vmax.f32 %v1253_v13, 0.0 }
 0x45a   : > { %v1318_v20 = vmax.f32 %v1264_v15, 0.0 }
 0x45b   : > { %v1316_v19 = vmax.f32 %v1256_v17, 0.0 }
 0x45c   : > { %v1332_v23 = vpack.c.bf16 %v1318_v20, %v1317_v18 }
 0x45d   : > { %v1331_v24 = vpack.c.bf16 %v1316_v19, %v1315_v22 }
 0x45f   : > { %2203 = vmatprep.mubr.bf16.mxu1 %v1331_v24 }
 0x460   : > { %2204 = vmatmul.mubr.bf16.vlgmr.msra.gmra.mrb[32].mxu1 %v1332_v23 }
 0x461   : > { %2259 = vmatpush3.bf16.msra.mxu1 %v2434_v4  ;;  %v2441_v4 = vld [vmem:[#allocation11 + $0x38] sm:$0xff]  }
 0x462   : > { %2252 = vmatprep.subr.bf16.mxu1 %v2435_v5  ;;  %2233 = vmatprep.subr.bf16.mxu0 %v2441_v4 }
 0x463   : > { %2234 = vmatpush3.bf16.msra.mxu0 %v2441_v4 }
 0x465   : > { %v2177_v25 = vpop.f32.mrb[36].mxu0  ;;  %2260 = vmatpush3.bf16.msra.mxu1 %v2435_v5  ;;  %v1921_v5 = vld [vmem:[%s3291_s1] ss:$0 sm:$0xff]  ;;  %s2616_s1 = sshll.u32 %s2702_s15, 4  ;;  %s2617_s1 = int_to_ptr.vmem [resolvable:$false] %s2616_s1 }
 0x466   : > { %v1277_v26 = vadd.f32 %v2177_v25, %v3160_v9  ;;  %v1268_v27 = vpop.f32.mrb[37].mxu0  ;;  %2253 = vmatprep.subr.bf16.mxu1 %v2436_v42  ;;  %s2618_s21 = scalar_lea.vmem %s2617_s1, 4096  ;;  %p2619_p13 = scmp.lt.s32.totalorder %s3208_s13, %s2617_s1 }
 0x467   : > { %v1269_v28 = vadd.f32 %v3160_v9, %v1268_v27  ;;  %v2178_v21 = vpop.f32.mrb[38].mxu0  ;;  %p2620_p0 = scmp.lt.s32.totalorder %s2618_s21, %s2612_s8 }
 0x468   : > { %v1280_v29 = vadd.f32 %v2178_v21, %v3160_v9  ;;  %v1271_v30 = vpop.f32.mrb[39].mxu0  ;;  %v1321_v32 = vmax.f32 %v1277_v26, 0.0 }
 0x469   : > { %v1272_v31 = vadd.f32 %v3160_v9, %v1271_v30  ;;  %2261 = vmatpush3.bf16.msra.mxu1 %v2436_v42  ;;  %v1319_v34 = vmax.f32 %v1269_v28, 0.0  ;;  %p2621_p2 = por %p2620_p0, %p2619_p13 }
 0x46a   : > { %v1322_v33 = vmax.f32 %v1280_v29, 0.0  ;;  %2254 = vmatprep.subr.bf16.mxu1 %v2437_v6 }
 0x46b   : > { %v1320_v35 = vmax.f32 %v1272_v31, 0.0  ;;  %p2622_p8 = pnand %p2621_p2, %p2615_p1 }
 0x46c   : > { %v1334_v40 = vpack.c.bf16 %v1322_v33, %v1321_v32 }
 0x46d   : > { %v1333_v41 = vpack.c.bf16 %v1320_v35, %v1319_v34  ;;  %2262 = vmatpush3.bf16.msra.mxu1 %v2437_v6 }
 0x46e   : > { %2255 = vmatprep.subr.bf16.mxu1 %v2438_v7 }
 0x46f   : > { %2207 = vmatprep.mubr.bf16.mxu1 %v1333_v41 }
 0x470   : > { %2208 = vmatmul.mubr.bf16.gmra.mrb[36].mxu1 %v1334_v40 }
 0x471   : > { %2263 = vmatpush3.bf16.msra.mxu1 %v2438_v7 }
 0x472   : > { %2256 = vmatprep.subr.bf16.mxu1 %v2439_v8 }
 0x475   : > { %v2181_v43 = vpop.f32.mrb[40].mxu0  ;;  %2264 = vmatpush3.bf16.msra.mxu1 %v2439_v8 }
 0x476   : > { %v1293_v36 = vadd.f32 %v2181_v43, %v3160_v9  ;;  %v1284_v44 = vpop.f32.mrb[41].mxu0  ;;  %2257 = vmatprep.subr.bf16.mxu1 %v2440_v3 }
 0x477   : > { %v1285_v45 = vadd.f32 %v3160_v9, %v1284_v44  ;;  %v2182_v46 = vpop.f32.mrb[42].mxu0 }
 0x478   : > { %v1296_v37 = vadd.f32 %v2182_v46, %v3160_v9  ;;  %v1287_v47 = vpop.f32.mrb[43].mxu0  ;;  %v1325_v49 = vmax.f32 %v1293_v36, 0.0 }
 0x479   : > { %v1288_v48 = vadd.f32 %v3160_v9, %v1287_v47  ;;  %v1323_v51 = vmax.f32 %v1285_v45, 0.0  ;;  %2265 = vmatpush3.bf16.msra.mxu1 %v2440_v3 }
 0x47a   : > { %v1326_v50 = vmax.f32 %v1296_v37, 0.0  ;;  %2258 = vmatprep.subr.bf16.mxu1 %v2441_v4 }
 0x47b   : > { %v1324_v52 = vmax.f32 %v1288_v48, 0.0 }
 0x47c   : > { %v1336_v38 = vpack.c.bf16 %v1326_v50, %v1325_v49 }
 0x47d   : > { %v1335_v53 = vpack.c.bf16 %v1324_v52, %v1323_v51  ;;  %2266 = vmatpush3.bf16.msra.mxu1 %v2441_v4 }
 0x47f   : > { %2211 = vmatprep.mubr.bf16.mxu1 %v1335_v53 }
 0x480   : > { %2212 = vmatmul.mubr.bf16.gmra.mrb[40].mxu1 %v1336_v38 }
 0x485   : > { %v2185_v54 = vpop.f32.mrb[44].mxu0 }
 0x486   : > { %v1309_v55 = vadd.f32 %v2185_v54, %v3160_v9  ;;  %v1300_v56 = vpop.f32.mrb[45].mxu0 }
 0x487   : > { %v1301_v57 = vadd.f32 %v3160_v9, %v1300_v56  ;;  %v2186_v58 = vpop.f32.mrb[46].mxu0 }
 0x488   : > { %v1312_v59 = vadd.f32 %v2186_v58, %v3160_v9  ;;  %v1303_v60 = vpop.f32.mrb[47].mxu0  ;;  %v1329_v61 = vmax.f32 %v1309_v55, 0.0 }
 0x489   : > { %v1304_v39 = vadd.f32 %v3160_v9, %v1303_v60  ;;  %v1327_v63 = vmax.f32 %v1301_v57, 0.0 }
 0x48a   : > { %v1330_v62 = vmax.f32 %v1312_v59, 0.0 }
 0x48b   : > { %v1328_v0 = vmax.f32 %v1304_v39, 0.0 }
 0x48c   : > { %v1338_v1 = vpack.c.bf16 %v1330_v62, %v1329_v61  ;;  %v1930_v62 = vld [vmem:[%s3292_s22] ss:$0 sm:$0xff] }
 0x48d   : > { %v1337_v2 = vpack.c.bf16 %v1328_v0, %v1327_v63 }
 0x48f   : > { %2215 = vmatprep.mubr.bf16.mxu1 %v1337_v2 }
 0x490   : > { %2216 = vmatmul.mubr.bf16.gmra.mrb[44].mxu1 %v1338_v1 }
 0x533   : > { %v2205_v42 = vpop.f32.mrb[32].mxu1 }
 0x534   : > { %v1453_v6 = vadd.f32 %v2205_v42, %v1921_v5  ;;  %v1444_v7 = vpop.f32.mrb[33].mxu1 }
 0x535   : > { %v1445_v8 = vadd.f32 %v1921_v5, %v1444_v7  ;;  %v2206_v9 = vpop.f32.mrb[34].mxu1 }
 0x536   : > { %v1456_v10 = vadd.f32 %v2206_v9, %v1921_v5  ;;  %v1447_v11 = vpop.f32.mrb[35].mxu1  ;;  %v1509_v13 = vmax.f32 %v1453_v6, 0.0 }
 0x537   : > { %v1448_v12 = vadd.f32 %v1921_v5, %v1447_v11  ;;  %v1507_v15 = vmax.f32 %v1445_v8, 0.0 }
 0x538   : > { %v1510_v14 = vmax.f32 %v1456_v10, 0.0 }
 0x539   : > { %v1508_v16 = vmax.f32 %v1448_v12, 0.0 }
 0x53a   : > { %v1524_v17 = vpack.c.bf16 %v1510_v14, %v1509_v13 }
 0x53b   : > { %v1523_v18 = vpack.c.bf16 %v1508_v16, %v1507_v15 }
 0x53d   : > { %2235 = vmatprep.mubr.bf16.mxu0 %v1523_v18 }
 0x53e   : > { %2236 = vmatmul.mubr.bf16.vlgmr.msra.gmra.mrb[48].mxu0 %v1524_v17 }
 0x543   : > { %v2209_v20 = vpop.f32.mrb[36].mxu1 }
 0x544   : > { %v1469_v22 = vadd.f32 %v2209_v20, %v1921_v5  ;;  %v1460_v19 = vpop.f32.mrb[37].mxu1 }
 0x545   : > { %v1461_v23 = vadd.f32 %v1921_v5, %v1460_v19  ;;  %v2210_v24 = vpop.f32.mrb[38].mxu1 }
 0x546   : > { %v1472_v25 = vadd.f32 %v2210_v24, %v1921_v5  ;;  %v1463_v26 = vpop.f32.mrb[39].mxu1  ;;  %v1513_v28 = vmax.f32 %v1469_v22, 0.0 }
 0x547   : > { %v1464_v27 = vadd.f32 %v1921_v5, %v1463_v26  ;;  %v1511_v29 = vmax.f32 %v1461_v23, 0.0 }
 0x548   : > { %v1514_v21 = vmax.f32 %v1472_v25, 0.0 }
 0x549   : > { %v1512_v30 = vmax.f32 %v1464_v27, 0.0 }
 0x54a   : > { %v1526_v31 = vpack.c.bf16 %v1514_v21, %v1513_v28 }
 0x54b   : > { %v1525_v32 = vpack.c.bf16 %v1512_v30, %v1511_v29 }
 0x54d   : > { %2239 = vmatprep.mubr.bf16.mxu0 %v1525_v32 }
 0x54e   : > { %2240 = vmatmul.mubr.bf16.gmra.mrb[52].mxu0 %v1526_v31 }
 0x553   : > { %v2213_v33 = vpop.f32.mrb[40].mxu1 }
 0x554   : > { %v1485_v34 = vadd.f32 %v2213_v33, %v1921_v5  ;;  %v1476_v35 = vpop.f32.mrb[41].mxu1 }
 0x555   : > { %v1477_v40 = vadd.f32 %v1921_v5, %v1476_v35  ;;  %v2214_v41 = vpop.f32.mrb[42].mxu1 }
 0x556   : > { %v1488_v43 = vadd.f32 %v2214_v41, %v1921_v5  ;;  %v1479_v36 = vpop.f32.mrb[43].mxu1  ;;  %v1517_v45 = vmax.f32 %v1485_v34, 0.0 }
 0x557   : > { %v1480_v44 = vadd.f32 %v1921_v5, %v1479_v36  ;;  %v1515_v37 = vmax.f32 %v1477_v40, 0.0 }
 0x558   : > { %v1518_v46 = vmax.f32 %v1488_v43, 0.0 }
 0x559   : > { %v1516_v47 = vmax.f32 %v1480_v44, 0.0 }
 0x55a   : > { %v1528_v48 = vpack.c.bf16 %v1518_v46, %v1517_v45 }
 0x55b   : > { %v1527_v49 = vpack.c.bf16 %v1516_v47, %v1515_v37 }
 0x55d   : > { %2243 = vmatprep.mubr.bf16.mxu1 %v1527_v49 }
 0x55e   : > { %2244 = vmatmul.mubr.bf16.vlgmr.msra.gmra.mrb[48].mxu1 %v1528_v48 }
 0x563   : > { %v2217_v50 = vpop.f32.mrb[44].mxu1 }
 0x564   : > { %v1501_v51 = vadd.f32 %v2217_v50, %v1921_v5  ;;  %v1492_v52 = vpop.f32.mrb[45].mxu1 }
 0x565   : > { %v1493_v38 = vadd.f32 %v1921_v5, %v1492_v52  ;;  %v2218_v53 = vpop.f32.mrb[46].mxu1 }
 0x566   : > { %v1504_v54 = vadd.f32 %v2218_v53, %v1921_v5  ;;  %v1495_v55 = vpop.f32.mrb[47].mxu1  ;;  %v1521_v57 = vmax.f32 %v1501_v51, 0.0 }
 0x567   : > { %v1496_v56 = vadd.f32 %v1921_v5, %v1495_v55  ;;  %v1519_v59 = vmax.f32 %v1493_v38, 0.0 }
 0x568   : > { %v1522_v58 = vmax.f32 %v1504_v54, 0.0 }
 0x569   : > { %v1520_v60 = vmax.f32 %v1496_v56, 0.0 }
 0x56a   : > { %v1530_v39 = vpack.c.bf16 %v1522_v58, %v1521_v57 }
 0x56b   : > { %v1529_v61 = vpack.c.bf16 %v1520_v60, %v1519_v59 }
 0x56d   : > { %2247 = vmatprep.mubr.bf16.mxu1 %v1529_v61 }
 0x56e   : > { %2248 = vmatmul.mubr.bf16.gmra.mrb[52].mxu1 %v1530_v39 }
 0x611   : > { %v2237_v63 = vpop.f32.mrb[48].mxu0 }
 0x612   : > { %v1645_v0 = vadd.f32 %v2237_v63, %v1930_v62  ;;  %v1636_v1 = vpop.f32.mrb[49].mxu0 }
 0x613   : > { %v1637_v2 = vadd.f32 %v1930_v62, %v1636_v1  ;;  %v2238_v3 = vpop.f32.mrb[50].mxu0 }
 0x614   : > { %1701 = vst [vmem:[%s3186_s24 + $0x10] sm:$0xff] %v1645_v0  ;;  %v1648_v4 = vadd.f32 %v2238_v3, %v1930_v62  ;;  %v1639_v5 = vpop.f32.mrb[51].mxu0 }
 0x615   : > { %1699 = vst [vmem:[%s3186_s24] sm:$0xff] %v1637_v2  ;;  %v1640_v42 = vadd.f32 %v1930_v62, %v1639_v5 }
 0x616   : > { %1702 = vst [vmem:[%s3186_s24 + $0x18] sm:$0xff] %v1648_v4 }
 0x617   : > { %1700 = vst [vmem:[%s3186_s24 + $0x8] sm:$0xff] %v1640_v42 }
 0x621   : > { %v2241_v6 = vpop.f32.mrb[52].mxu0 }
 0x622   : > { %v1661_v7 = vadd.f32 %v2241_v6, %v1930_v62  ;;  %v1652_v8 = vpop.f32.mrb[53].mxu0 }
 0x623   : > { %v1653_v9 = vadd.f32 %v1930_v62, %v1652_v8  ;;  %v2242_v10 = vpop.f32.mrb[54].mxu0 }
 0x624   : > { %1705 = vst [vmem:[%s3186_s24 + $0x30] sm:$0xff] %v1661_v7  ;;  %v1664_v11 = vadd.f32 %v2242_v10, %v1930_v62  ;;  %v1655_v12 = vpop.f32.mrb[55].mxu0 }
 0x625   : > { %1703 = vst [vmem:[%s3186_s24 + $0x20] sm:$0xff] %v1653_v9  ;;  %v1656_v13 = vadd.f32 %v1930_v62, %v1655_v12 }
 0x626   : > { %1706 = vst [vmem:[%s3186_s24 + $0x38] sm:$0xff] %v1664_v11 }
 0x627   : > { %1704 = vst [vmem:[%s3186_s24 + $0x28] sm:$0xff] %v1656_v13 }
 0x631   : > { %v2245_v14 = vpop.f32.mrb[48].mxu1 }
 0x632   : > { %v1677_v15 = vadd.f32 %v2245_v14, %v1930_v62  ;;  %v1668_v16 = vpop.f32.mrb[49].mxu1 }
 0x633   : > { %v1669_v17 = vadd.f32 %v1930_v62, %v1668_v16  ;;  %v2246_v18 = vpop.f32.mrb[50].mxu1 }
 0x634   : > { %1709 = vst [vmem:[%s3186_s24 + $0x50] sm:$0xff] %v1677_v15  ;;  %v1680_v20 = vadd.f32 %v2246_v18, %v1930_v62  ;;  %v1671_v22 = vpop.f32.mrb[51].mxu1 }
 0x635   : > { %1707 = vst [vmem:[%s3186_s24 + $0x40] sm:$0xff] %v1669_v17  ;;  %v1672_v19 = vadd.f32 %v1930_v62, %v1671_v22 }
 0x636   : > { %1710 = vst [vmem:[%s3186_s24 + $0x58] sm:$0xff] %v1680_v20 }
 0x637   : > { %1708 = vst [vmem:[%s3186_s24 + $0x48] sm:$0xff] %v1672_v19 }
 0x641   : > { %v2249_v23 = vpop.f32.mrb[52].mxu1 }
 0x642   : > { %v1693_v24 = vadd.f32 %v2249_v23, %v1930_v62  ;;  %v1684_v25 = vpop.f32.mrb[53].mxu1 }
 0x643   : > { %v1685_v26 = vadd.f32 %v1930_v62, %v1684_v25  ;;  %v2250_v27 = vpop.f32.mrb[54].mxu1 }
 0x644   : > { %1713 = vst [vmem:[%s3186_s24 + $0x70] sm:$0xff] %v1693_v24  ;;  %v1696_v28 = vadd.f32 %v2250_v27, %v1930_v62  ;;  %v1687_v21 = vpop.f32.mrb[55].mxu1 }
 0x645   : > { %1711 = vst [vmem:[%s3186_s24 + $0x60] sm:$0xff] %v1685_v26  ;;  %v1688_v29 = vadd.f32 %v1930_v62, %v1687_v21 }
 0x646   : > { %1714 = vst [vmem:[%s3186_s24 + $0x78] sm:$0xff] %v1696_v28 }
 0x647   : > { %1712 = vst [vmem:[%s3186_s24 + $0x68] sm:$0xff] %v1688_v29 }
 0x648   : > { %2625 = shalt.err (!%p2622_p8)
}
 0x649   : > { %s2626_s12 = scalar_lea.hbm %s3206_s27, 2048  ;;  %s2630_s28 = scalar_lea.hbm %s3293_s29, 4096 }
 0x64a   : > { %p2627_p6 = scmp.ne.s32.totalorder %s3206_s27, %s2626_s12  ;;  %p2631_p3 = scmp.lt.u32.totalorder %s3206_s27, %s3293_s29 }
 0x64b   : > { %p2632_p5 = scmp.lt.u32.totalorder %s2630_s28, %s2626_s12  ;;  %p2634_p7 = scmp.lt.u32.totalorder %s2626_s12, %s3206_s27 }
 0x64c   : > { %p2628_p10 = pnand %p2627_p6, %p3294_p4 }
 0x64d   : > { %p2633_p9 = por %p2632_p5, %p2631_p3 }
 0x64e   : > { %p2629_p11 = pneg %p2628_p10 }
 0x64f   : > { %p2635_p12 = por %p2634_p7, %p2633_p9 }
 0x651   : > { %p2636_p1 = pnand %p2635_p12, %p2629_p11 }
 0x653   : > { %2639 = shalt.err (!%p2636_p1)
}
 0x654   : > { %s2703_s8 = smov 128   ;;  %s2704_s15 = smov 8  }
 0x655   : > { %2289 = dma.vmem_to_hbm [thread:$0]  (%p3294_p4), %s3208_s13, 2048, %s3206_s27, %s1716_s23, %s2703_s8, %s2703_s8, %s2704_s15  }
 0x656 PF: > { %s1744_s1 = sand.u32 1, %s2678_s17   ;;  %p3295_p13 = scmp.ne.s32.totalorder %s3282_s14, 0 }
 0x657   : > { %p3296_p0 = scmp.ge.s32.totalorder %s2690_s20, 2  ;;  %s1745_s21 = scalar_lea.sflag [#allocation4], %s1744_s1 }
 0x659   : > { %p2312_p2 = pnand %p3296_p0, %p3295_p13 }
 0x65b   : > { %2673 = dma.done.wait (!%p2312_p2), %s1745_s21, 2048  }
 0x65c   : > { %2675 = vsyncadd (!%p2312_p2), %s1745_s21, 4294965248  ;;  %p27_p8 = scmp.ge.s32.totalorder %s2938_s16, 4   ;;  %s3297_s17 = smov %s2682_s18 }
 0x65d   : > { %s3298_s18 = smov %s2686_s19  ;;  %s3299_s19 = smov %s2950_s10 }
 0x65e   : > { %s3300_s20 = smov %s2938_s16  ;;  %29 = sbr.rel (!%p27_p8) target bundleno = 13 (0xd), region = 129 }
 0x665   :  { %1750 = vsyncpa [#allocation3], 1 }
 0x666   :  { %1752 = vsyncpa [#allocation3 + $0x1], 1 }
 0x667   :  { %1753 = vsyncpa [#allocation6], 1 }
 0x668   :  { %1754 = vsyncpa [#allocation9], 1 }
 0x669   :  { %1755 = vsyncpa [#allocation12], 1 }
 0x66a   :  { %1756 = vsyncpa [#allocation4], 1 }
 0x66b   :  { %1758 = vsyncpa [#allocation4 + $0x1], 1 }

</bundles_post_ra>
